<compile_context>
chip_gen: v7x
topology: tpu7x:2x2x1
jax: 0.10.0
libtpu: 0.0.40
codegen_flags: <defaults>
</compile_context>

<pallas_src>
import jax
import jax.numpy as jnp
from jax.experimental import pallas as pl
from jax.experimental.pallas import tpu as pltpu

# ---------------------------------------------------------------------------
# Synthetic problem sizes (small)
# ---------------------------------------------------------------------------
B = 8             # batch
T = 8             # time steps
D0, D1 = 16, 12   # opt.input_dims   = [16, 12]   (2 modalities)
H0, H1 = 32, 24   # opt.hidden_dims  = "32,24"
Z = 20            # opt.hybrid_in_size
HC = 24           # opt.hybrid_cell_size
OC = 16           # opt.output_cell_dim
OD = 4            # opt.output_dim (>1 -> Softmax head)
OUT_LANES = 128   # lane-dense padded output width

HS = H0 + H1      # 56 : width of concat(h0, h1) / concat(c0, c1)
GS = 4 * HS       # 224: fused gate-slab width


# ---------------------------------------------------------------------------
# Fused Pallas kernel: full T-step recurrence + hybrid MLP + output head
# ---------------------------------------------------------------------------
def _lsthm_fused_kernel(xflat_ref, Wx_ref, Wg_ref, Wh1_ref, Wh2_ref,
                        Wo1_ref, Whead2_ref, bsm_ref, out_ref):
    f32 = jnp.float32

    # --- hoisted input projection: one dot for all timesteps / modalities; ---
    # --- gate biases already folded in via the constant-1 feature lane.     ---
    xproj = jnp.dot(xflat_ref[...], Wx_ref[...],
                    preferred_element_type=f32)          # (T*B, GS)

    Wg = Wg_ref[...]       # (HS+Z, GS) fused recurrent gate weight (2x on ch cols)
    Wh1 = Wh1_ref[...]     # (HS, HC)
    Wh2 = Wh2_ref[...]     # (HC, Z)

    bsm = bsm_ref[...]     # (3, 128) small-bias slab; hoisted broadcasts
    bh1 = jnp.broadcast_to(bsm[0:1, :HC], (B, HC))
    bh2 = jnp.broadcast_to(bsm[1:2, :Z], (B, Z))
    bo1 = jnp.broadcast_to(bsm[2:3, :OC], (B, OC))

    hz = jnp.zeros((B, HS + Z), f32)    # concat(h0, h1, z); all-zero initial state
    ccat = jnp.zeros((B, HS), f32)      # concat(c0, c1)

    # Static (fully unrolled) timestep loop -- no grid-step overhead.
    for t in range(T):
        # Fused gate pre-activation for BOTH cells: one recurrent dot + add.
        s = xproj[t * B:(t + 1) * B, :] + jnp.dot(hz, Wg,
                                                  preferred_element_type=f32)
        g = jax.nn.sigmoid(s)                       # one EUP slab over all 224 lanes
        chcat = 2.0 * g[:, 3 * HS:] - 1.0           # == tanh(unscaled ch pre-act)
        ccat = g[:, :HS] * ccat + g[:, HS:2 * HS] * chcat
        hcat = jnp.tanh(ccat) * g[:, 2 * HS:3 * HS]  # concat(h0, h1)
        # fc_hybrid (SimpleNet): Linear -> ReLU -> Dropout(identity) -> Linear -> Sigmoid
        hidden = jnp.maximum(
            jnp.dot(hcat, Wh1, preferred_element_type=f32) + bh1, 0.0)
        z = jax.nn.sigmoid(
            jnp.dot(hidden, Wh2, preferred_element_type=f32) + bh2)
        hz = jnp.concatenate([hcat, z], axis=1)     # reused by next gate dot AND head

    # fc_out (SimpleNet): Linear -> ReLU -> Dropout(identity) -> Linear -> Softmax(dim=1)
    hidden_o = jnp.maximum(
        jnp.dot(hz, Wo1_ref[...], preferred_element_type=f32) + bo1, 0.0)
    head2 = Whead2_ref[...]              # rows [0:OC] = Wo2 (lane-padded), row OC = bias
    # Wo2 is lane-padded to 128 output lanes with zero columns beyond OD and
    # its bias padded with -1e30, so the full-row softmax equals the real
    # OD-lane softmax (pad probabilities are exactly 0).  Keep in f32.
    logits = (jnp.dot(hidden_o, head2[:OC, :], preferred_element_type=f32)
              + head2[OC:OC + 1, :])                # (B, OUT_LANES)
    m = jnp.max(logits, axis=1, keepdims=True)
    e = jnp.exp(logits - m)
    out_ref[...] = e / jnp.sum(e, axis=1, keepdims=True)


# ---------------------------------------------------------------------------
# Parameter setup / wrapper-side weight fusion
# ---------------------------------------------------------------------------
def init_params(key):
    ks = iter(jax.random.split(key, 32))

    def rnd(shape, scale=0.1):
        return (scale * jax.random.normal(next(ks), shape)).astype(jnp.float32)

    p = {}
    # LSTHMCell 0: W: D0->4H0, U: H0->4H0, V: Z->4H0 ; bias = b_W + b_U + b_V
    p["W0"] = rnd((D0, 4 * H0)); p["U0"] = rnd((H0, 4 * H0)); p["V0"] = rnd((Z, 4 * H0))
    p["b0"] = rnd((4 * H0,))
    # LSTHMCell 1
    p["W1"] = rnd((D1, 4 * H1)); p["U1"] = rnd((H1, 4 * H1)); p["V1"] = rnd((Z, 4 * H1))
    p["b1"] = rnd((4 * H1,))
    # fc_hybrid SimpleNet: (H0+H1) -> HC -> Z, Sigmoid
    p["Wh1"] = rnd((H0 + H1, HC)); p["bh1"] = rnd((HC,))
    p["Wh2"] = rnd((HC, Z)); p["bh2"] = rnd((Z,))
    # fc_out SimpleNet: (H0+H1+Z) -> OC -> OD, Softmax
    p["Wo1"] = rnd((H0 + H1 + Z, OC)); p["bo1"] = rnd((OC,))
    p["Wo2"] = rnd((OC, OD)); p["bo2"] = rnd((OD,))
    return p


def _split4(w, hd):
    # gate-column order [f | i | o | ch] (matches the PyTorch slicing)
    return w[..., :hd], w[..., hd:2 * hd], w[..., 2 * hd:3 * hd], w[..., 3 * hd:]


def _fuse_gate_cols(blk0, blk1):
    # Regrouped fused columns: [f0 f1 | i0 i1 | o0 o1 | 2*ch0 2*ch1]
    # (the 2x on the ch columns folds the tanh-via-sigmoid scale, opt 5).
    f0, i0, o0, c0 = blk0
    f1, i1, o1, c1 = blk1
    return jnp.concatenate([f0, f1, i0, i1, o0, o1, 2.0 * c0, 2.0 * c1], axis=-1)


def lsthm_forward_pallas(x0, x1, p):
    f32 = jnp.float32

    # ---- fused gate weights (exact reparameterization, wrapper-side) ----
    zx0 = jnp.zeros((D0, H1), f32)
    zx1 = jnp.zeros((D1, H0), f32)
    Wx_x0 = _fuse_gate_cols(_split4(p["W0"], H0), (zx0, zx0, zx0, zx0))       # (D0, GS)
    Wx_x1 = _fuse_gate_cols((zx1, zx1, zx1, zx1), _split4(p["W1"], H1))       # (D1, GS)
    b_row = _fuse_gate_cols(tuple(b.reshape(1, -1) for b in _split4(p["b0"], H0)),
                            tuple(b.reshape(1, -1) for b in _split4(p["b1"], H1)))
    Wx_aug = jnp.concatenate([Wx_x0, Wx_x1, b_row], axis=0)                   # (D0+D1+1, GS)

    zh0 = jnp.zeros((H0, H1), f32)
    zh1 = jnp.zeros((H1, H0), f32)
    Wg_h0 = _fuse_gate_cols(_split4(p["U0"], H0), (zh0, zh0, zh0, zh0))       # (H0, GS)
    Wg_h1 = _fuse_gate_cols((zh1, zh1, zh1, zh1), _split4(p["U1"], H1))       # (H1, GS)
    Wg_z = _fuse_gate_cols(_split4(p["V0"], H0), _split4(p["V1"], H1))        # (Z, GS)
    Wg = jnp.concatenate([Wg_h0, Wg_h1, Wg_z], axis=0)                        # (HS+Z, GS)

    # ---- lane-dense padded output head: [Wo2_pad ; bo2_pad] in one slab ----
    Wo2_pad = jnp.concatenate(
        [p["Wo2"], jnp.zeros((OC, OUT_LANES - OD), f32)], axis=1)
    bo2_pad = jnp.concatenate(
        [p["bo2"], jnp.full((OUT_LANES - OD,), -1e30, f32)]).reshape(1, OUT_LANES)
    Whead2 = jnp.concatenate([Wo2_pad, bo2_pad], axis=0)                      # (OC+1, 128)

    # ---- small biases packed into a single (3, 128) slab ----
    def _pad_row(v):
        return jnp.concatenate(
            [v, jnp.zeros((OUT_LANES - v.shape[0],), f32)]).reshape(1, OUT_LANES)
    bsm = jnp.concatenate(
        [_pad_row(p["bh1"]), _pad_row(p["bh2"]), _pad_row(p["bo1"])], axis=0)

    # ---- inputs: both modalities + constant-1 bias lane, time-major, flat ----
    ones = jnp.ones((B, T, 1), f32)
    xflat = jnp.transpose(
        jnp.concatenate([x0, x1, ones], axis=2), (1, 0, 2)
    ).reshape(T * B, D0 + D1 + 1)                                             # (T*B, 29)

    args = [xflat, Wx_aug, Wg, p["Wh1"], p["Wh2"], p["Wo1"], Whead2, bsm]
    vmem_spec = pl.BlockSpec(memory_space=pltpu.MemorySpace.VMEM)
    out_pad = pl.pallas_call(
        _lsthm_fused_kernel,
        out_shape=jax.ShapeDtypeStruct((B, OUT_LANES), jnp.float32),
        in_specs=[vmem_spec] * len(args),
        out_specs=vmem_spec,
    )(*args)
    return out_pad[:, :OD]


# ---------------------------------------------------------------------------
# Pure-JAX reference (mirrors the PyTorch forward, eval mode)
# ---------------------------------------------------------------------------
def lsthm_forward_reference(x0, x1, p):
    hp = jax.lax.Precision.HIGHEST

    def lin(x, W, b):
        return jnp.dot(x, W, precision=hp) + b

    def cell(x, c, h, z, W, U, V, b, Hd):
        sums = (jnp.dot(x, W, precision=hp) + jnp.dot(h, U, precision=hp)
                + jnp.dot(z, V, precision=hp) + b)
        f = jax.nn.sigmoid(sums[:, :Hd])
        i = jax.nn.sigmoid(sums[:, Hd:2 * Hd])
        o = jax.nn.sigmoid(sums[:, 2 * Hd:3 * Hd])
        ch = jnp.tanh(sums[:, 3 * Hd:])
        c_t = f * c + i * ch
        h_t = jnp.tanh(c_t) * o
        return c_t, h_t

    h0 = jnp.zeros((B, H0), jnp.float32); c0 = jnp.zeros((B, H0), jnp.float32)
    h1 = jnp.zeros((B, H1), jnp.float32); c1 = jnp.zeros((B, H1), jnp.float32)
    z = jnp.zeros((B, Z), jnp.float32)
    for t in range(T):
        c0, h0 = cell(x0[:, t], c0, h0, z, p["W0"], p["U0"], p["V0"], p["b0"], H0)
        c1, h1 = cell(x1[:, t], c1, h1, z, p["W1"], p["U1"], p["V1"], p["b1"], H1)
        hcat = jnp.concatenate([h0, h1], axis=1)
        z = jax.nn.sigmoid(lin(jnp.maximum(lin(hcat, p["Wh1"], p["bh1"]), 0.0),
                               p["Wh2"], p["bh2"]))
    total = jnp.concatenate([h0, h1, z], axis=1)
    hidden = jnp.maximum(lin(total, p["Wo1"], p["bo1"]), 0.0)
    logits = lin(hidden, p["Wo2"], p["bo2"])
    return jax.nn.softmax(logits, axis=1)


if __name__ == "__main__":
    key = jax.random.PRNGKey(0)
    kp, kx0, kx1 = jax.random.split(key, 3)
    params = init_params(kp)
    x0 = jax.random.normal(kx0, (B, T, D0), dtype=jnp.float32)
    x1 = jax.random.normal(kx1, (B, T, D1), dtype=jnp.float32)

    out = lsthm_forward_pallas(x0, x1, params)
    out = jax.block_until_ready(out)

    ref = lsthm_forward_reference(x0, x1, params)
    assert out.shape == (B, OD), out.shape
    max_diff = float(jnp.max(jnp.abs(out - ref)))
    assert jnp.allclose(out, ref, atol=2e-3, rtol=2e-3), f"max diff {max_diff}"
    print("KERNEL_OK")
</pallas_src>

<mosaic_0001>
module attributes {stable_mosaic.version = 11 : i64} {
  func.func @_lsthm_fused_kernel(%arg0: memref<64x29xf32, #tpu.memory_space<vmem>>, %arg1: memref<29x224xf32, #tpu.memory_space<vmem>>, %arg2: memref<76x224xf32, #tpu.memory_space<vmem>>, %arg3: memref<56x24xf32, #tpu.memory_space<vmem>>, %arg4: memref<24x20xf32, #tpu.memory_space<vmem>>, %arg5: memref<76x16xf32, #tpu.memory_space<vmem>>, %arg6: memref<17x128xf32, #tpu.memory_space<vmem>>, %arg7: memref<3x128xf32, #tpu.memory_space<vmem>>, %arg8: memref<8x128xf32, #tpu.memory_space<vmem>>) attributes {dimension_semantics = [], scalar_prefetch = 0 : i64, scratch_operands = 0 : i64, tpu.core_type = #tpu.core_type<tc>} {
    %c0 = arith.constant 0 : index
    %c0_0 = arith.constant 0 : index
    %0 = vector.load %arg0[%c0, %c0_0] : memref<64x29xf32, #tpu.memory_space<vmem>>, vector<64x29xf32>
    %c0_1 = arith.constant 0 : index
    %c0_2 = arith.constant 0 : index
    %1 = vector.load %arg1[%c0_1, %c0_2] : memref<29x224xf32, #tpu.memory_space<vmem>>, vector<29x224xf32>
    %cst = arith.constant dense<0.000000e+00> : vector<64x224xf32>
    %2 = tpu.matmul %0, %1, %cst {dimension_numbers = #tpu.dot_dimension_numbers<[1], [0], [0], [1], [0, 0, 1, 1], [], []>} : vector<64x29xf32>, vector<29x224xf32>, vector<64x224xf32> -> vector<64x224xf32>
    %c0_3 = arith.constant 0 : index
    %c0_4 = arith.constant 0 : index
    %3 = vector.load %arg2[%c0_3, %c0_4] : memref<76x224xf32, #tpu.memory_space<vmem>>, vector<76x224xf32>
    %c0_5 = arith.constant 0 : index
    %c0_6 = arith.constant 0 : index
    %4 = vector.load %arg3[%c0_5, %c0_6] : memref<56x24xf32, #tpu.memory_space<vmem>>, vector<56x24xf32>
    %c0_7 = arith.constant 0 : index
    %c0_8 = arith.constant 0 : index
    %5 = vector.load %arg4[%c0_7, %c0_8] : memref<24x20xf32, #tpu.memory_space<vmem>>, vector<24x20xf32>
    %c0_9 = arith.constant 0 : index
    %c0_10 = arith.constant 0 : index
    %6 = vector.load %arg7[%c0_9, %c0_10] : memref<3x128xf32, #tpu.memory_space<vmem>>, vector<3x128xf32>
    %7 = vector.extract_strided_slice %6 {offsets = [0, 0], sizes = [1, 24], strides = [1, 1]} : vector<3x128xf32> to vector<1x24xf32>
    %8 = vector.shape_cast %7 : vector<1x24xf32> to vector<1x24xf32>
    %9 = vector.broadcast %8 : vector<1x24xf32> to vector<8x24xf32>
    %10 = vector.extract_strided_slice %6 {offsets = [1, 0], sizes = [1, 20], strides = [1, 1]} : vector<3x128xf32> to vector<1x20xf32>
    %11 = vector.shape_cast %10 : vector<1x20xf32> to vector<1x20xf32>
    %12 = vector.broadcast %11 : vector<1x20xf32> to vector<8x20xf32>
    %13 = vector.extract_strided_slice %6 {offsets = [2, 0], sizes = [1, 16], strides = [1, 1]} : vector<3x128xf32> to vector<1x16xf32>
    %14 = vector.shape_cast %13 : vector<1x16xf32> to vector<1x16xf32>
    %15 = vector.broadcast %14 : vector<1x16xf32> to vector<8x16xf32>
    %cst_11 = arith.constant 0.000000e+00 : f32
    %16 = vector.broadcast %cst_11 : f32 to vector<8x76xf32>
    %cst_12 = arith.constant 0.000000e+00 : f32
    %17 = vector.broadcast %cst_12 : f32 to vector<8x56xf32>
    %18 = vector.extract_strided_slice %2 {offsets = [0, 0], sizes = [8, 224], strides = [1, 1]} : vector<64x224xf32> to vector<8x224xf32>
    %cst_13 = arith.constant dense<0.000000e+00> : vector<8x224xf32>
    %19 = tpu.matmul %16, %3, %cst_13 {dimension_numbers = #tpu.dot_dimension_numbers<[1], [0], [0], [1], [0, 0, 1, 1], [], []>} : vector<8x76xf32>, vector<76x224xf32>, vector<8x224xf32> -> vector<8x224xf32>
    %20 = arith.addf %18, %19 : vector<8x224xf32>
    %21 = arith.negf %20 : vector<8x224xf32>
    %22 = math.exp %21 : vector<8x224xf32>
    %cst_14 = arith.constant 1.000000e+00 : f32
    %23 = vector.broadcast %cst_14 : f32 to vector<8x224xf32>
    %24 = arith.addf %23, %22 : vector<8x224xf32>
    %25 = arith.divf %23, %24 : vector<8x224xf32>
    %26 = vector.extract_strided_slice %25 {offsets = [0, 168], sizes = [8, 56], strides = [1, 1]} : vector<8x224xf32> to vector<8x56xf32>
    %cst_15 = arith.constant 2.000000e+00 : f32
    %27 = vector.broadcast %cst_15 : f32 to vector<8x56xf32>
    %28 = arith.mulf %27, %26 : vector<8x56xf32>
    %cst_16 = arith.constant 1.000000e+00 : f32
    %29 = vector.broadcast %cst_16 : f32 to vector<8x56xf32>
    %30 = arith.subf %28, %29 : vector<8x56xf32>
    %31 = vector.extract_strided_slice %25 {offsets = [0, 0], sizes = [8, 56], strides = [1, 1]} : vector<8x224xf32> to vector<8x56xf32>
    %32 = arith.mulf %31, %17 : vector<8x56xf32>
    %33 = vector.extract_strided_slice %25 {offsets = [0, 56], sizes = [8, 56], strides = [1, 1]} : vector<8x224xf32> to vector<8x56xf32>
    %34 = arith.mulf %33, %30 : vector<8x56xf32>
    %35 = arith.addf %32, %34 : vector<8x56xf32>
    %36 = math.tanh %35 : vector<8x56xf32>
    %37 = vector.extract_strided_slice %25 {offsets = [0, 112], sizes = [8, 56], strides = [1, 1]} : vector<8x224xf32> to vector<8x56xf32>
    %38 = arith.mulf %36, %37 : vector<8x56xf32>
    %cst_17 = arith.constant dense<0.000000e+00> : vector<8x24xf32>
    %39 = tpu.matmul %38, %4, %cst_17 {dimension_numbers = #tpu.dot_dimension_numbers<[1], [0], [0], [1], [0, 0, 1, 1], [], []>} : vector<8x56xf32>, vector<56x24xf32>, vector<8x24xf32> -> vector<8x24xf32>
    %40 = arith.addf %39, %9 : vector<8x24xf32>
    %cst_18 = arith.constant 0.000000e+00 : f32
    %41 = vector.broadcast %cst_18 : f32 to vector<8x24xf32>
    %42 = arith.maximumf %40, %41 : vector<8x24xf32>
    %cst_19 = arith.constant dense<0.000000e+00> : vector<8x20xf32>
    %43 = tpu.matmul %42, %5, %cst_19 {dimension_numbers = #tpu.dot_dimension_numbers<[1], [0], [0], [1], [0, 0, 1, 1], [], []>} : vector<8x24xf32>, vector<24x20xf32>, vector<8x20xf32> -> vector<8x20xf32>
    %44 = arith.addf %43, %12 : vector<8x20xf32>
    %45 = arith.negf %44 : vector<8x20xf32>
    %46 = math.exp %45 : vector<8x20xf32>
    %cst_20 = arith.constant 1.000000e+00 : f32
    %47 = vector.broadcast %cst_20 : f32 to vector<8x20xf32>
    %48 = arith.addf %47, %46 : vector<8x20xf32>
    %49 = arith.divf %47, %48 : vector<8x20xf32>
    %50 = tpu.concatenate %38, %49 in 1 : vector<8x56xf32>, vector<8x20xf32> -> vector<8x76xf32>
    %51 = vector.extract_strided_slice %2 {offsets = [8, 0], sizes = [8, 224], strides = [1, 1]} : vector<64x224xf32> to vector<8x224xf32>
    %cst_21 = arith.constant dense<0.000000e+00> : vector<8x224xf32>
    %52 = tpu.matmul %50, %3, %cst_21 {dimension_numbers = #tpu.dot_dimension_numbers<[1], [0], [0], [1], [0, 0, 1, 1], [], []>} : vector<8x76xf32>, vector<76x224xf32>, vector<8x224xf32> -> vector<8x224xf32>
    %53 = arith.addf %51, %52 : vector<8x224xf32>
    %54 = arith.negf %53 : vector<8x224xf32>
    %55 = math.exp %54 : vector<8x224xf32>
    %cst_22 = arith.constant 1.000000e+00 : f32
    %56 = vector.broadcast %cst_22 : f32 to vector<8x224xf32>
    %57 = arith.addf %56, %55 : vector<8x224xf32>
    %58 = arith.divf %56, %57 : vector<8x224xf32>
    %59 = vector.extract_strided_slice %58 {offsets = [0, 168], sizes = [8, 56], strides = [1, 1]} : vector<8x224xf32> to vector<8x56xf32>
    %cst_23 = arith.constant 2.000000e+00 : f32
    %60 = vector.broadcast %cst_23 : f32 to vector<8x56xf32>
    %61 = arith.mulf %60, %59 : vector<8x56xf32>
    %cst_24 = arith.constant 1.000000e+00 : f32
    %62 = vector.broadcast %cst_24 : f32 to vector<8x56xf32>
    %63 = arith.subf %61, %62 : vector<8x56xf32>
    %64 = vector.extract_strided_slice %58 {offsets = [0, 0], sizes = [8, 56], strides = [1, 1]} : vector<8x224xf32> to vector<8x56xf32>
    %65 = arith.mulf %64, %35 : vector<8x56xf32>
    %66 = vector.extract_strided_slice %58 {offsets = [0, 56], sizes = [8, 56], strides = [1, 1]} : vector<8x224xf32> to vector<8x56xf32>
    %67 = arith.mulf %66, %63 : vector<8x56xf32>
    %68 = arith.addf %65, %67 : vector<8x56xf32>
    %69 = math.tanh %68 : vector<8x56xf32>
    %70 = vector.extract_strided_slice %58 {offsets = [0, 112], sizes = [8, 56], strides = [1, 1]} : vector<8x224xf32> to vector<8x56xf32>
    %71 = arith.mulf %69, %70 : vector<8x56xf32>
    %cst_25 = arith.constant dense<0.000000e+00> : vector<8x24xf32>
    %72 = tpu.matmul %71, %4, %cst_25 {dimension_numbers = #tpu.dot_dimension_numbers<[1], [0], [0], [1], [0, 0, 1, 1], [], []>} : vector<8x56xf32>, vector<56x24xf32>, vector<8x24xf32> -> vector<8x24xf32>
    %73 = arith.addf %72, %9 : vector<8x24xf32>
    %cst_26 = arith.constant 0.000000e+00 : f32
    %74 = vector.broadcast %cst_26 : f32 to vector<8x24xf32>
    %75 = arith.maximumf %73, %74 : vector<8x24xf32>
    %cst_27 = arith.constant dense<0.000000e+00> : vector<8x20xf32>
    %76 = tpu.matmul %75, %5, %cst_27 {dimension_numbers = #tpu.dot_dimension_numbers<[1], [0], [0], [1], [0, 0, 1, 1], [], []>} : vector<8x24xf32>, vector<24x20xf32>, vector<8x20xf32> -> vector<8x20xf32>
    %77 = arith.addf %76, %12 : vector<8x20xf32>
    %78 = arith.negf %77 : vector<8x20xf32>
    %79 = math.exp %78 : vector<8x20xf32>
    %cst_28 = arith.constant 1.000000e+00 : f32
    %80 = vector.broadcast %cst_28 : f32 to vector<8x20xf32>
    %81 = arith.addf %80, %79 : vector<8x20xf32>
    %82 = arith.divf %80, %81 : vector<8x20xf32>
    %83 = tpu.concatenate %71, %82 in 1 : vector<8x56xf32>, vector<8x20xf32> -> vector<8x76xf32>
    %84 = vector.extract_strided_slice %2 {offsets = [16, 0], sizes = [8, 224], strides = [1, 1]} : vector<64x224xf32> to vector<8x224xf32>
    %cst_29 = arith.constant dense<0.000000e+00> : vector<8x224xf32>
    %85 = tpu.matmul %83, %3, %cst_29 {dimension_numbers = #tpu.dot_dimension_numbers<[1], [0], [0], [1], [0, 0, 1, 1], [], []>} : vector<8x76xf32>, vector<76x224xf32>, vector<8x224xf32> -> vector<8x224xf32>
    %86 = arith.addf %84, %85 : vector<8x224xf32>
    %87 = arith.negf %86 : vector<8x224xf32>
    %88 = math.exp %87 : vector<8x224xf32>
    %cst_30 = arith.constant 1.000000e+00 : f32
    %89 = vector.broadcast %cst_30 : f32 to vector<8x224xf32>
    %90 = arith.addf %89, %88 : vector<8x224xf32>
    %91 = arith.divf %89, %90 : vector<8x224xf32>
    %92 = vector.extract_strided_slice %91 {offsets = [0, 168], sizes = [8, 56], strides = [1, 1]} : vector<8x224xf32> to vector<8x56xf32>
    %cst_31 = arith.constant 2.000000e+00 : f32
    %93 = vector.broadcast %cst_31 : f32 to vector<8x56xf32>
    %94 = arith.mulf %93, %92 : vector<8x56xf32>
    %cst_32 = arith.constant 1.000000e+00 : f32
    %95 = vector.broadcast %cst_32 : f32 to vector<8x56xf32>
    %96 = arith.subf %94, %95 : vector<8x56xf32>
    %97 = vector.extract_strided_slice %91 {offsets = [0, 0], sizes = [8, 56], strides = [1, 1]} : vector<8x224xf32> to vector<8x56xf32>
    %98 = arith.mulf %97, %68 : vector<8x56xf32>
    %99 = vector.extract_strided_slice %91 {offsets = [0, 56], sizes = [8, 56], strides = [1, 1]} : vector<8x224xf32> to vector<8x56xf32>
    %100 = arith.mulf %99, %96 : vector<8x56xf32>
    %101 = arith.addf %98, %100 : vector<8x56xf32>
    %102 = math.tanh %101 : vector<8x56xf32>
    %103 = vector.extract_strided_slice %91 {offsets = [0, 112], sizes = [8, 56], strides = [1, 1]} : vector<8x224xf32> to vector<8x56xf32>
    %104 = arith.mulf %102, %103 : vector<8x56xf32>
    %cst_33 = arith.constant dense<0.000000e+00> : vector<8x24xf32>
    %105 = tpu.matmul %104, %4, %cst_33 {dimension_numbers = #tpu.dot_dimension_numbers<[1], [0], [0], [1], [0, 0, 1, 1], [], []>} : vector<8x56xf32>, vector<56x24xf32>, vector<8x24xf32> -> vector<8x24xf32>
    %106 = arith.addf %105, %9 : vector<8x24xf32>
    %cst_34 = arith.constant 0.000000e+00 : f32
    %107 = vector.broadcast %cst_34 : f32 to vector<8x24xf32>
    %108 = arith.maximumf %106, %107 : vector<8x24xf32>
    %cst_35 = arith.constant dense<0.000000e+00> : vector<8x20xf32>
    %109 = tpu.matmul %108, %5, %cst_35 {dimension_numbers = #tpu.dot_dimension_numbers<[1], [0], [0], [1], [0, 0, 1, 1], [], []>} : vector<8x24xf32>, vector<24x20xf32>, vector<8x20xf32> -> vector<8x20xf32>
    %110 = arith.addf %109, %12 : vector<8x20xf32>
    %111 = arith.negf %110 : vector<8x20xf32>
    %112 = math.exp %111 : vector<8x20xf32>
    %cst_36 = arith.constant 1.000000e+00 : f32
    %113 = vector.broadcast %cst_36 : f32 to vector<8x20xf32>
    %114 = arith.addf %113, %112 : vector<8x20xf32>
    %115 = arith.divf %113, %114 : vector<8x20xf32>
    %116 = tpu.concatenate %104, %115 in 1 : vector<8x56xf32>, vector<8x20xf32> -> vector<8x76xf32>
    %117 = vector.extract_strided_slice %2 {offsets = [24, 0], sizes = [8, 224], strides = [1, 1]} : vector<64x224xf32> to vector<8x224xf32>
    %cst_37 = arith.constant dense<0.000000e+00> : vector<8x224xf32>
    %118 = tpu.matmul %116, %3, %cst_37 {dimension_numbers = #tpu.dot_dimension_numbers<[1], [0], [0], [1], [0, 0, 1, 1], [], []>} : vector<8x76xf32>, vector<76x224xf32>, vector<8x224xf32> -> vector<8x224xf32>
    %119 = arith.addf %117, %118 : vector<8x224xf32>
    %120 = arith.negf %119 : vector<8x224xf32>
    %121 = math.exp %120 : vector<8x224xf32>
    %cst_38 = arith.constant 1.000000e+00 : f32
    %122 = vector.broadcast %cst_38 : f32 to vector<8x224xf32>
    %123 = arith.addf %122, %121 : vector<8x224xf32>
    %124 = arith.divf %122, %123 : vector<8x224xf32>
    %125 = vector.extract_strided_slice %124 {offsets = [0, 168], sizes = [8, 56], strides = [1, 1]} : vector<8x224xf32> to vector<8x56xf32>
    %cst_39 = arith.constant 2.000000e+00 : f32
    %126 = vector.broadcast %cst_39 : f32 to vector<8x56xf32>
    %127 = arith.mulf %126, %125 : vector<8x56xf32>
    %cst_40 = arith.constant 1.000000e+00 : f32
    %128 = vector.broadcast %cst_40 : f32 to vector<8x56xf32>
    %129 = arith.subf %127, %128 : vector<8x56xf32>
    %130 = vector.extract_strided_slice %124 {offsets = [0, 0], sizes = [8, 56], strides = [1, 1]} : vector<8x224xf32> to vector<8x56xf32>
    %131 = arith.mulf %130, %101 : vector<8x56xf32>
    %132 = vector.extract_strided_slice %124 {offsets = [0, 56], sizes = [8, 56], strides = [1, 1]} : vector<8x224xf32> to vector<8x56xf32>
    %133 = arith.mulf %132, %129 : vector<8x56xf32>
    %134 = arith.addf %131, %133 : vector<8x56xf32>
    %135 = math.tanh %134 : vector<8x56xf32>
    %136 = vector.extract_strided_slice %124 {offsets = [0, 112], sizes = [8, 56], strides = [1, 1]} : vector<8x224xf32> to vector<8x56xf32>
    %137 = arith.mulf %135, %136 : vector<8x56xf32>
    %cst_41 = arith.constant dense<0.000000e+00> : vector<8x24xf32>
    %138 = tpu.matmul %137, %4, %cst_41 {dimension_numbers = #tpu.dot_dimension_numbers<[1], [0], [0], [1], [0, 0, 1, 1], [], []>} : vector<8x56xf32>, vector<56x24xf32>, vector<8x24xf32> -> vector<8x24xf32>
    %139 = arith.addf %138, %9 : vector<8x24xf32>
    %cst_42 = arith.constant 0.000000e+00 : f32
    %140 = vector.broadcast %cst_42 : f32 to vector<8x24xf32>
    %141 = arith.maximumf %139, %140 : vector<8x24xf32>
    %cst_43 = arith.constant dense<0.000000e+00> : vector<8x20xf32>
    %142 = tpu.matmul %141, %5, %cst_43 {dimension_numbers = #tpu.dot_dimension_numbers<[1], [0], [0], [1], [0, 0, 1, 1], [], []>} : vector<8x24xf32>, vector<24x20xf32>, vector<8x20xf32> -> vector<8x20xf32>
    %143 = arith.addf %142, %12 : vector<8x20xf32>
    %144 = arith.negf %143 : vector<8x20xf32>
    %145 = math.exp %144 : vector<8x20xf32>
    %cst_44 = arith.constant 1.000000e+00 : f32
    %146 = vector.broadcast %cst_44 : f32 to vector<8x20xf32>
    %147 = arith.addf %146, %145 : vector<8x20xf32>
    %148 = arith.divf %146, %147 : vector<8x20xf32>
    %149 = tpu.concatenate %137, %148 in 1 : vector<8x56xf32>, vector<8x20xf32> -> vector<8x76xf32>
    %150 = vector.extract_strided_slice %2 {offsets = [32, 0], sizes = [8, 224], strides = [1, 1]} : vector<64x224xf32> to vector<8x224xf32>
    %cst_45 = arith.constant dense<0.000000e+00> : vector<8x224xf32>
    %151 = tpu.matmul %149, %3, %cst_45 {dimension_numbers = #tpu.dot_dimension_numbers<[1], [0], [0], [1], [0, 0, 1, 1], [], []>} : vector<8x76xf32>, vector<76x224xf32>, vector<8x224xf32> -> vector<8x224xf32>
    %152 = arith.addf %150, %151 : vector<8x224xf32>
    %153 = arith.negf %152 : vector<8x224xf32>
    %154 = math.exp %153 : vector<8x224xf32>
    %cst_46 = arith.constant 1.000000e+00 : f32
    %155 = vector.broadcast %cst_46 : f32 to vector<8x224xf32>
    %156 = arith.addf %155, %154 : vector<8x224xf32>
    %157 = arith.divf %155, %156 : vector<8x224xf32>
    %158 = vector.extract_strided_slice %157 {offsets = [0, 168], sizes = [8, 56], strides = [1, 1]} : vector<8x224xf32> to vector<8x56xf32>
    %cst_47 = arith.constant 2.000000e+00 : f32
    %159 = vector.broadcast %cst_47 : f32 to vector<8x56xf32>
    %160 = arith.mulf %159, %158 : vector<8x56xf32>
    %cst_48 = arith.constant 1.000000e+00 : f32
    %161 = vector.broadcast %cst_48 : f32 to vector<8x56xf32>
    %162 = arith.subf %160, %161 : vector<8x56xf32>
    %163 = vector.extract_strided_slice %157 {offsets = [0, 0], sizes = [8, 56], strides = [1, 1]} : vector<8x224xf32> to vector<8x56xf32>
    %164 = arith.mulf %163, %134 : vector<8x56xf32>
    %165 = vector.extract_strided_slice %157 {offsets = [0, 56], sizes = [8, 56], strides = [1, 1]} : vector<8x224xf32> to vector<8x56xf32>
    %166 = arith.mulf %165, %162 : vector<8x56xf32>
    %167 = arith.addf %164, %166 : vector<8x56xf32>
    %168 = math.tanh %167 : vector<8x56xf32>
    %169 = vector.extract_strided_slice %157 {offsets = [0, 112], sizes = [8, 56], strides = [1, 1]} : vector<8x224xf32> to vector<8x56xf32>
    %170 = arith.mulf %168, %169 : vector<8x56xf32>
    %cst_49 = arith.constant dense<0.000000e+00> : vector<8x24xf32>
    %171 = tpu.matmul %170, %4, %cst_49 {dimension_numbers = #tpu.dot_dimension_numbers<[1], [0], [0], [1], [0, 0, 1, 1], [], []>} : vector<8x56xf32>, vector<56x24xf32>, vector<8x24xf32> -> vector<8x24xf32>
    %172 = arith.addf %171, %9 : vector<8x24xf32>
    %cst_50 = arith.constant 0.000000e+00 : f32
    %173 = vector.broadcast %cst_50 : f32 to vector<8x24xf32>
    %174 = arith.maximumf %172, %173 : vector<8x24xf32>
    %cst_51 = arith.constant dense<0.000000e+00> : vector<8x20xf32>
    %175 = tpu.matmul %174, %5, %cst_51 {dimension_numbers = #tpu.dot_dimension_numbers<[1], [0], [0], [1], [0, 0, 1, 1], [], []>} : vector<8x24xf32>, vector<24x20xf32>, vector<8x20xf32> -> vector<8x20xf32>
    %176 = arith.addf %175, %12 : vector<8x20xf32>
    %177 = arith.negf %176 : vector<8x20xf32>
    %178 = math.exp %177 : vector<8x20xf32>
    %cst_52 = arith.constant 1.000000e+00 : f32
    %179 = vector.broadcast %cst_52 : f32 to vector<8x20xf32>
    %180 = arith.addf %179, %178 : vector<8x20xf32>
    %181 = arith.divf %179, %180 : vector<8x20xf32>
    %182 = tpu.concatenate %170, %181 in 1 : vector<8x56xf32>, vector<8x20xf32> -> vector<8x76xf32>
    %183 = vector.extract_strided_slice %2 {offsets = [40, 0], sizes = [8, 224], strides = [1, 1]} : vector<64x224xf32> to vector<8x224xf32>
    %cst_53 = arith.constant dense<0.000000e+00> : vector<8x224xf32>
    %184 = tpu.matmul %182, %3, %cst_53 {dimension_numbers = #tpu.dot_dimension_numbers<[1], [0], [0], [1], [0, 0, 1, 1], [], []>} : vector<8x76xf32>, vector<76x224xf32>, vector<8x224xf32> -> vector<8x224xf32>
    %185 = arith.addf %183, %184 : vector<8x224xf32>
    %186 = arith.negf %185 : vector<8x224xf32>
    %187 = math.exp %186 : vector<8x224xf32>
    %cst_54 = arith.constant 1.000000e+00 : f32
    %188 = vector.broadcast %cst_54 : f32 to vector<8x224xf32>
    %189 = arith.addf %188, %187 : vector<8x224xf32>
    %190 = arith.divf %188, %189 : vector<8x224xf32>
    %191 = vector.extract_strided_slice %190 {offsets = [0, 168], sizes = [8, 56], strides = [1, 1]} : vector<8x224xf32> to vector<8x56xf32>
    %cst_55 = arith.constant 2.000000e+00 : f32
    %192 = vector.broadcast %cst_55 : f32 to vector<8x56xf32>
    %193 = arith.mulf %192, %191 : vector<8x56xf32>
    %cst_56 = arith.constant 1.000000e+00 : f32
    %194 = vector.broadcast %cst_56 : f32 to vector<8x56xf32>
    %195 = arith.subf %193, %194 : vector<8x56xf32>
    %196 = vector.extract_strided_slice %190 {offsets = [0, 0], sizes = [8, 56], strides = [1, 1]} : vector<8x224xf32> to vector<8x56xf32>
    %197 = arith.mulf %196, %167 : vector<8x56xf32>
    %198 = vector.extract_strided_slice %190 {offsets = [0, 56], sizes = [8, 56], strides = [1, 1]} : vector<8x224xf32> to vector<8x56xf32>
    %199 = arith.mulf %198, %195 : vector<8x56xf32>
    %200 = arith.addf %197, %199 : vector<8x56xf32>
    %201 = math.tanh %200 : vector<8x56xf32>
    %202 = vector.extract_strided_slice %190 {offsets = [0, 112], sizes = [8, 56], strides = [1, 1]} : vector<8x224xf32> to vector<8x56xf32>
    %203 = arith.mulf %201, %202 : vector<8x56xf32>
    %cst_57 = arith.constant dense<0.000000e+00> : vector<8x24xf32>
    %204 = tpu.matmul %203, %4, %cst_57 {dimension_numbers = #tpu.dot_dimension_numbers<[1], [0], [0], [1], [0, 0, 1, 1], [], []>} : vector<8x56xf32>, vector<56x24xf32>, vector<8x24xf32> -> vector<8x24xf32>
    %205 = arith.addf %204, %9 : vector<8x24xf32>
    %cst_58 = arith.constant 0.000000e+00 : f32
    %206 = vector.broadcast %cst_58 : f32 to vector<8x24xf32>
    %207 = arith.maximumf %205, %206 : vector<8x24xf32>
    %cst_59 = arith.constant dense<0.000000e+00> : vector<8x20xf32>
    %208 = tpu.matmul %207, %5, %cst_59 {dimension_numbers = #tpu.dot_dimension_numbers<[1], [0], [0], [1], [0, 0, 1, 1], [], []>} : vector<8x24xf32>, vector<24x20xf32>, vector<8x20xf32> -> vector<8x20xf32>
    %209 = arith.addf %208, %12 : vector<8x20xf32>
    %210 = arith.negf %209 : vector<8x20xf32>
    %211 = math.exp %210 : vector<8x20xf32>
    %cst_60 = arith.constant 1.000000e+00 : f32
    %212 = vector.broadcast %cst_60 : f32 to vector<8x20xf32>
    %213 = arith.addf %212, %211 : vector<8x20xf32>
    %214 = arith.divf %212, %213 : vector<8x20xf32>
    %215 = tpu.concatenate %203, %214 in 1 : vector<8x56xf32>, vector<8x20xf32> -> vector<8x76xf32>
    %216 = vector.extract_strided_slice %2 {offsets = [48, 0], sizes = [8, 224], strides = [1, 1]} : vector<64x224xf32> to vector<8x224xf32>
    %cst_61 = arith.constant dense<0.000000e+00> : vector<8x224xf32>
    %217 = tpu.matmul %215, %3, %cst_61 {dimension_numbers = #tpu.dot_dimension_numbers<[1], [0], [0], [1], [0, 0, 1, 1], [], []>} : vector<8x76xf32>, vector<76x224xf32>, vector<8x224xf32> -> vector<8x224xf32>
    %218 = arith.addf %216, %217 : vector<8x224xf32>
    %219 = arith.negf %218 : vector<8x224xf32>
    %220 = math.exp %219 : vector<8x224xf32>
    %cst_62 = arith.constant 1.000000e+00 : f32
    %221 = vector.broadcast %cst_62 : f32 to vector<8x224xf32>
    %222 = arith.addf %221, %220 : vector<8x224xf32>
    %223 = arith.divf %221, %222 : vector<8x224xf32>
    %224 = vector.extract_strided_slice %223 {offsets = [0, 168], sizes = [8, 56], strides = [1, 1]} : vector<8x224xf32> to vector<8x56xf32>
    %cst_63 = arith.constant 2.000000e+00 : f32
    %225 = vector.broadcast %cst_63 : f32 to vector<8x56xf32>
    %226 = arith.mulf %225, %224 : vector<8x56xf32>
    %cst_64 = arith.constant 1.000000e+00 : f32
    %227 = vector.broadcast %cst_64 : f32 to vector<8x56xf32>
    %228 = arith.subf %226, %227 : vector<8x56xf32>
    %229 = vector.extract_strided_slice %223 {offsets = [0, 0], sizes = [8, 56], strides = [1, 1]} : vector<8x224xf32> to vector<8x56xf32>
    %230 = arith.mulf %229, %200 : vector<8x56xf32>
    %231 = vector.extract_strided_slice %223 {offsets = [0, 56], sizes = [8, 56], strides = [1, 1]} : vector<8x224xf32> to vector<8x56xf32>
    %232 = arith.mulf %231, %228 : vector<8x56xf32>
    %233 = arith.addf %230, %232 : vector<8x56xf32>
    %234 = math.tanh %233 : vector<8x56xf32>
    %235 = vector.extract_strided_slice %223 {offsets = [0, 112], sizes = [8, 56], strides = [1, 1]} : vector<8x224xf32> to vector<8x56xf32>
    %236 = arith.mulf %234, %235 : vector<8x56xf32>
    %cst_65 = arith.constant dense<0.000000e+00> : vector<8x24xf32>
    %237 = tpu.matmul %236, %4, %cst_65 {dimension_numbers = #tpu.dot_dimension_numbers<[1], [0], [0], [1], [0, 0, 1, 1], [], []>} : vector<8x56xf32>, vector<56x24xf32>, vector<8x24xf32> -> vector<8x24xf32>
    %238 = arith.addf %237, %9 : vector<8x24xf32>
    %cst_66 = arith.constant 0.000000e+00 : f32
    %239 = vector.broadcast %cst_66 : f32 to vector<8x24xf32>
    %240 = arith.maximumf %238, %239 : vector<8x24xf32>
    %cst_67 = arith.constant dense<0.000000e+00> : vector<8x20xf32>
    %241 = tpu.matmul %240, %5, %cst_67 {dimension_numbers = #tpu.dot_dimension_numbers<[1], [0], [0], [1], [0, 0, 1, 1], [], []>} : vector<8x24xf32>, vector<24x20xf32>, vector<8x20xf32> -> vector<8x20xf32>
    %242 = arith.addf %241, %12 : vector<8x20xf32>
    %243 = arith.negf %242 : vector<8x20xf32>
    %244 = math.exp %243 : vector<8x20xf32>
    %cst_68 = arith.constant 1.000000e+00 : f32
    %245 = vector.broadcast %cst_68 : f32 to vector<8x20xf32>
    %246 = arith.addf %245, %244 : vector<8x20xf32>
    %247 = arith.divf %245, %246 : vector<8x20xf32>
    %248 = tpu.concatenate %236, %247 in 1 : vector<8x56xf32>, vector<8x20xf32> -> vector<8x76xf32>
    %249 = vector.extract_strided_slice %2 {offsets = [56, 0], sizes = [8, 224], strides = [1, 1]} : vector<64x224xf32> to vector<8x224xf32>
    %cst_69 = arith.constant dense<0.000000e+00> : vector<8x224xf32>
    %250 = tpu.matmul %248, %3, %cst_69 {dimension_numbers = #tpu.dot_dimension_numbers<[1], [0], [0], [1], [0, 0, 1, 1], [], []>} : vector<8x76xf32>, vector<76x224xf32>, vector<8x224xf32> -> vector<8x224xf32>
    %251 = arith.addf %249, %250 : vector<8x224xf32>
    %252 = arith.negf %251 : vector<8x224xf32>
    %253 = math.exp %252 : vector<8x224xf32>
    %cst_70 = arith.constant 1.000000e+00 : f32
    %254 = vector.broadcast %cst_70 : f32 to vector<8x224xf32>
    %255 = arith.addf %254, %253 : vector<8x224xf32>
    %256 = arith.divf %254, %255 : vector<8x224xf32>
    %257 = vector.extract_strided_slice %256 {offsets = [0, 168], sizes = [8, 56], strides = [1, 1]} : vector<8x224xf32> to vector<8x56xf32>
    %cst_71 = arith.constant 2.000000e+00 : f32
    %258 = vector.broadcast %cst_71 : f32 to vector<8x56xf32>
    %259 = arith.mulf %258, %257 : vector<8x56xf32>
    %cst_72 = arith.constant 1.000000e+00 : f32
    %260 = vector.broadcast %cst_72 : f32 to vector<8x56xf32>
    %261 = arith.subf %259, %260 : vector<8x56xf32>
    %262 = vector.extract_strided_slice %256 {offsets = [0, 0], sizes = [8, 56], strides = [1, 1]} : vector<8x224xf32> to vector<8x56xf32>
    %263 = arith.mulf %262, %233 : vector<8x56xf32>
    %264 = vector.extract_strided_slice %256 {offsets = [0, 56], sizes = [8, 56], strides = [1, 1]} : vector<8x224xf32> to vector<8x56xf32>
    %265 = arith.mulf %264, %261 : vector<8x56xf32>
    %266 = arith.addf %263, %265 : vector<8x56xf32>
    %267 = math.tanh %266 : vector<8x56xf32>
    %268 = vector.extract_strided_slice %256 {offsets = [0, 112], sizes = [8, 56], strides = [1, 1]} : vector<8x224xf32> to vector<8x56xf32>
    %269 = arith.mulf %267, %268 : vector<8x56xf32>
    %cst_73 = arith.constant dense<0.000000e+00> : vector<8x24xf32>
    %270 = tpu.matmul %269, %4, %cst_73 {dimension_numbers = #tpu.dot_dimension_numbers<[1], [0], [0], [1], [0, 0, 1, 1], [], []>} : vector<8x56xf32>, vector<56x24xf32>, vector<8x24xf32> -> vector<8x24xf32>
    %271 = arith.addf %270, %9 : vector<8x24xf32>
    %cst_74 = arith.constant 0.000000e+00 : f32
    %272 = vector.broadcast %cst_74 : f32 to vector<8x24xf32>
    %273 = arith.maximumf %271, %272 : vector<8x24xf32>
    %cst_75 = arith.constant dense<0.000000e+00> : vector<8x20xf32>
    %274 = tpu.matmul %273, %5, %cst_75 {dimension_numbers = #tpu.dot_dimension_numbers<[1], [0], [0], [1], [0, 0, 1, 1], [], []>} : vector<8x24xf32>, vector<24x20xf32>, vector<8x20xf32> -> vector<8x20xf32>
    %275 = arith.addf %274, %12 : vector<8x20xf32>
    %276 = arith.negf %275 : vector<8x20xf32>
    %277 = math.exp %276 : vector<8x20xf32>
    %cst_76 = arith.constant 1.000000e+00 : f32
    %278 = vector.broadcast %cst_76 : f32 to vector<8x20xf32>
    %279 = arith.addf %278, %277 : vector<8x20xf32>
    %280 = arith.divf %278, %279 : vector<8x20xf32>
    %281 = tpu.concatenate %269, %280 in 1 : vector<8x56xf32>, vector<8x20xf32> -> vector<8x76xf32>
    %c0_77 = arith.constant 0 : index
    %c0_78 = arith.constant 0 : index
    %282 = vector.load %arg5[%c0_77, %c0_78] : memref<76x16xf32, #tpu.memory_space<vmem>>, vector<76x16xf32>
    %cst_79 = arith.constant dense<0.000000e+00> : vector<8x16xf32>
    %283 = tpu.matmul %281, %282, %cst_79 {dimension_numbers = #tpu.dot_dimension_numbers<[1], [0], [0], [1], [0, 0, 1, 1], [], []>} : vector<8x76xf32>, vector<76x16xf32>, vector<8x16xf32> -> vector<8x16xf32>
    %284 = arith.addf %283, %15 : vector<8x16xf32>
    %cst_80 = arith.constant 0.000000e+00 : f32
    %285 = vector.broadcast %cst_80 : f32 to vector<8x16xf32>
    %286 = arith.maximumf %284, %285 : vector<8x16xf32>
    %c0_81 = arith.constant 0 : index
    %c0_82 = arith.constant 0 : index
    %287 = vector.load %arg6[%c0_81, %c0_82] : memref<17x128xf32, #tpu.memory_space<vmem>>, vector<17x128xf32>
    %288 = vector.extract_strided_slice %287 {offsets = [0, 0], sizes = [16, 128], strides = [1, 1]} : vector<17x128xf32> to vector<16x128xf32>
    %cst_83 = arith.constant dense<0.000000e+00> : vector<8x128xf32>
    %289 = tpu.matmul %286, %288, %cst_83 {dimension_numbers = #tpu.dot_dimension_numbers<[1], [0], [0], [1], [0, 0, 1, 1], [], []>} : vector<8x16xf32>, vector<16x128xf32>, vector<8x128xf32> -> vector<8x128xf32>
    %290 = vector.extract_strided_slice %287 {offsets = [16, 0], sizes = [1, 128], strides = [1, 1]} : vector<17x128xf32> to vector<1x128xf32>
    %291 = vector.broadcast %290 : vector<1x128xf32> to vector<8x128xf32>
    %292 = arith.addf %289, %291 : vector<8x128xf32>
    %cst_84 = arith.constant dense<0xFF800000> : vector<8xf32>
    %293 = vector.multi_reduction <maximumf>, %292, %cst_84 [1] : vector<8x128xf32> to vector<8xf32>
    %294 = vector.shape_cast %293 : vector<8xf32> to vector<8x1xf32>
    %295 = vector.broadcast %294 : vector<8x1xf32> to vector<8x128xf32>
    %296 = arith.subf %292, %295 : vector<8x128xf32>
    %297 = math.exp %296 : vector<8x128xf32>
    %cst_85 = arith.constant dense<0.000000e+00> : vector<8xf32>
    %298 = vector.multi_reduction <add>, %297, %cst_85 [1] : vector<8x128xf32> to vector<8xf32>
    %299 = vector.shape_cast %298 : vector<8xf32> to vector<8x1xf32>
    %300 = vector.broadcast %299 : vector<8x1xf32> to vector<8x128xf32>
    %301 = arith.divf %297, %300 : vector<8x128xf32>
    %c0_86 = arith.constant 0 : index
    %c0_87 = arith.constant 0 : index
    %302 = vector.load %arg8[%c0_86, %c0_87] : memref<8x128xf32, #tpu.memory_space<vmem>>, vector<8x128xf32>
    tpu.vector_store %arg8[%c0_86, %c0_87], %301 {strides = array<i32>} : memref<8x128xf32, #tpu.memory_space<vmem>>, vector<8x128xf32>,
    return
  }
}

</mosaic_0001>

<bundles_post_ra>
// kernel: tpu_custom_call.1
= control target key start
LH: loop header
LB: loop body
LE: loop exit
PB: predicated region body
PF: predicated region fallthrough
CT: control target
= control target key end

     0   :  { %vm71_vm0 = vcmask 1044480   ;;  %vm3488_vm1 = vmmov 1   ;;  %v3489_v12 = vmov 0.0   ;;  %vm46_vm3 = vcmask 236544   ;;  %s4195_s0 = inlined_call_operand.vmem [shape: f32[64,29], index: 0, kind: input, shape index: {}]   ;;  %s4196_s1 = inlined_call_operand.vmem [shape: f32[29,224], index: 1, kind: input, shape index: {}]   ;;  %s4197_s2 = inlined_call_operand.vmem [shape: f32[76,224], index: 2, kind: input, shape index: {}]   ;;  %s4198_s3 = inlined_call_operand.vmem [shape: f32[56,24], index: 3, kind: input, shape index: {}]   ;;  %s4199_s4 = inlined_call_operand.vmem [shape: f32[24,20], index: 4, kind: input, shape index: {}]   ;;  %s4200_s5 = inlined_call_operand.vmem [shape: f32[76,16], index: 5, kind: input, shape index: {}]   ;;  %s4201_s6 = inlined_call_operand.vmem [shape: f32[17,128], index: 6, kind: input, shape index: {}]   ;;  %s4202_s7 = inlined_call_operand.vmem [shape: f32[3,128], index: 7, kind: input, shape index: {}]   ;;  %s4203_s8 = inlined_call_operand.hbm [shape: f32[8,128], index: 8, kind: output, shape index: {}]  }
   0x1   :  { %v39_v0 = vld [vmem:[%s4196_s1 + $0x8] sm:$0xff]  ;;  %v41_v1 = vld [vmem:[%s4196_s1 + $0x18] sm:$0xff]  ;;  %v38_v2 = vld [vmem:[%s4196_s1] sm:$0xff]  ;;  %142 = vmatprep.mubr.f32.mxu0 %v3489_v12 }
   0x2   :  { %v3021_v3 = vpack.c.bf16 %v41_v1, %v39_v0  ;;  %v40_v4 = vld [vmem:[%s4196_s1 + $0x10] sm:$0xff]  ;;  %v43_v5 = vld [vmem:[%s4196_s1 + $0x28] sm:$0xff]  ;;  %v45_v6 = vld [vmem:[%s4196_s1 + $0x38] sm:$0x1f] }
   0x3   :  { %v3023_v7 = vpack.c.bf16 %v40_v4, %v38_v2  ;;  %v3025_v8 = vpack.c.bf16 %v45_v6, %v43_v5  ;;  %vm3560_vm2 = vmpackc.low %vm71_vm0, %vm3488_vm1  ;;  %v42_v10 = vld [vmem:[%s4196_s1 + $0x20] sm:$0xff]  ;;  %v44_v11 = vld [vmem:[%s4196_s1 + $0x30] sm:$0x1f] }
   0x4   :  { %3022 = vmatprep.subr.bf16.mxu0 %v3021_v3  ;;  %v192_v13 = vld [vmem:[%s4197_s2 + $0x8] sm:$0xff]  ;;  %v3028_v14 = vpack.c.bf16 %v44_v11, %v42_v10  ;;  %v194_v15 = vld [vmem:[%s4197_s2 + $0x18] sm:$0xff]  ;;  %v191_v17 = vld [vmem:[%s4197_s2] sm:$0xff] }
   0x5   :  { %3024 = vmatpush1.bf16.msra.mxu0 %v3023_v7  ;;  %v3579_v16 = vpack.c.bf16 %v194_v15, %v192_v13  ;;  %v193_v18 = vld [vmem:[%s4197_s2 + $0x10] sm:$0xff]  ;;  %v196_v19 = vld [vmem:[%s4197_s2 + $0x28] sm:$0xff]  ;;  %v198_v20 = vld [vmem:[%s4197_s2 + $0x38] sm:$0xff] }
   0x6   :  { %3027 = vmatprep.subr.msk.bf16.mxu0 %vm3560_vm2, %v3025_v8  ;;  %v30_v21 = vld [vmem:[%s4195_s0] sm:$0xff]  ;;  %v3598_v22 = vpack.c.bf16 %v193_v18, %v191_v17  ;;  %v3601_v23 = vpack.c.bf16 %v198_v20, %v196_v19  ;;  %v197_v25 = vld [vmem:[%s4197_s2 + $0x30] sm:$0xff]  ;;  %v200_v26 = vld [vmem:[%s4197_s2 + $0x48] sm:$0xff] }
   0x7   :  { %v195_v24 = vld [vmem:[%s4197_s2 + $0x20] sm:$0xff]  ;;  %v202_v27 = vld [vmem:[%s4197_s2 + $0x58] sm:$0xff]  ;;  %v31_v28 = vld [vmem:[%s4195_s0 + $0x8] sm:$0xff] }
   0x8   :  { %v3621_v29 = vpack.c.bf16 %v197_v25, %v195_v24 }
   0x9   :  { %3030 = vmatpush1.bf16.msk.msra.mxu0 %vm3560_vm2, %v3028_v14 }
   0xa   :  { %3032 = vmatprep.subr.bf16.mxu0 %v3579_v16 }
   0xc   :  { %2590 = vmatmul.mubr.msk.f32.vlgmr.msra.gmra.mrb[0].mxu0 %vm46_vm3, %v30_v21 }
   0xd   :  { %3034 = vmatpush1.bf16.msra.mxu0 %v3598_v22  ;;  %148 = vmatprep.mubr.f32.mxu0 %v3489_v12 }
   0xe   :  { %13 = vsyncpa [#allocation3], 0  ;;  %3036 = vmatprep.subr.bf16.mxu0 %v3601_v23  ;;  %v3624_v30 = vpack.c.bf16 %v202_v27, %v200_v26  ;;  %v199_v31 = vld [vmem:[%s4197_s2 + $0x40] sm:$0xff]  ;;  %v201_v32 = vld [vmem:[%s4197_s2 + $0x50] sm:$0xff]  ;;  %vm238_vm4 = vcmask 1043456   ;;  %v3491_v4 = vmov 0.0|0.0  }
   0xf   :  { %v204_v33 = vld [vmem:[%s4197_s2 + $0x68] sm:$0xff]  ;;  %v206_v34 = vld [vmem:[%s4197_s2 + $0x78] sm:$0xff]  ;;  %v32_v35 = vld [vmem:[%s4195_s0 + $0x10] sm:$0xff]  ;;  %v3644_v36 = vpack.c.bf16 %v201_v32, %v199_v31  ;;  %3053 = vmatprep.subr.bf16.mxu1 %v3491_v4  ;;  %vm3492_vm6 = vmmov 0   ;;  %s3493_s21 = smov 72   ;;  %vm350_vm7 = vcmask 130048   ;;  %v222_v32 = vlaneseq }
  0x10   :  { %2591 = vmatmul.mubr.msk.f32.gmra.mrb[2].mxu0 %vm46_vm3, %v31_v28  ;;  %v3647_v37 = vpack.c.bf16 %v206_v34, %v204_v33  ;;  %v203_v38 = vld [vmem:[%s4197_s2 + $0x60] sm:$0xff]  ;;  %v205_v39 = vld [vmem:[%s4197_s2 + $0x70] sm:$0xff]  ;;  %v208_v40 = vld [vmem:[%s4197_s2 + $0x88] sm:$0xff]  ;;  %2797 = vmatprep.mubr.msk.f32.mxu1 %vm3492_vm6, %v3489_v12  ;;  %vm354_vm8 = vcmask 457728   ;;  %vm429_vm9 = vcmask 195584   ;;  %s3494_s27 = smov 56  }
  0x11   :  { %154 = vmatprep.mubr.f32.mxu0 %v3489_v12  ;;  %3038 = vmatpush1.bf16.msra.mxu0 %v3621_v29  ;;  %v210_v41 = vld [vmem:[%s4197_s2 + $0x98] sm:$0xf]  ;;  %v3667_v43 = vpack.c.bf16 %v205_v39, %v203_v38  ;;  %v207_v45 = vld [vmem:[%s4197_s2 + $0x80] sm:$0xff]  ;;  %v209_v46 = vld [vmem:[%s4197_s2 + $0x90] sm:$0xf]  ;;  %v3799_v33 = vshrl.u32 %v222_v32, 7 }
  0x12   :  { %3040 = vmatprep.subr.bf16.mxu0 %v3624_v30  ;;  %v33_v42 = vld [vmem:[%s4195_s0 + $0x18] sm:$0xff]  ;;  %v3670_v44 = vpack.c.bf16 %v210_v41, %v208_v40  ;;  %vm3679_vm5 = vmpackc.low %vm238_vm4, %vm3488_vm1  ;;  %v34_v48 = vld [vmem:[%s4195_s0 + $0x20] sm:$0xff]  ;;  %v3689_v49 = vpack.c.bf16 %v209_v46, %v207_v45  ;;  %vm234_vm10 = vcmask 621568  }
  0x13   :  { %v35_v50 = vld [vmem:[%s4195_s0 + $0x28] sm:$0xff]  ;;  %v36_v51 = vld [vmem:[%s4195_s0 + $0x30] sm:$0xff]  ;;  %v37_v52 = vld [vmem:[%s4195_s0 + $0x38] sm:$0xff]  ;;  %s3490_s0 = smov 16   ;;  %v224_v34 = vsub.s32 0, %v3799_v33  ;;  %v228_v45 = vsub.s32 1, %v3799_v33 }
  0x14   :  { %2592 = vmatmul.mubr.msk.f32.gmra.mrb[4].mxu0 %vm46_vm3, %v32_v35  ;;  %v211_v1 = vld [vmem:[%s4198_s3] sm:$0xff]  ;;  %v212_v2 = vld [vmem:[%s4198_s3 + $0x8] sm:$0xff]  ;;  %v213_v5 = vld [vmem:[%s4198_s3 + $0x10] sm:$0xff] }
  0x15   :  { %160 = vmatprep.mubr.f32.mxu0 %v3489_v12  ;;  %3042 = vmatpush1.bf16.msra.mxu0 %v3644_v36  ;;  %v3740_v3 = vpack.c.bf16 %v212_v2, %v211_v1  ;;  %v214_v6 = vld [vmem:[%s4198_s3 + $0x18] sm:$0xff]  ;;  %v215_v8 = vld [vmem:[%s4198_s3 + $0x20] sm:$0xff]  ;;  %v216_v9 = vld [vmem:[%s4198_s3 + $0x28] sm:$0xff] }
  0x16   :  { %3044 = vmatprep.subr.bf16.mxu0 %v3647_v37  ;;  %v3751_v7 = vpack.c.bf16 %v214_v6, %v213_v5  ;;  %v3762_v10 = vpack.c.bf16 %v216_v9, %v215_v8  ;;  %v3770_v14 = vld [vmem:[%s4198_s3 + $0x30] sm:$0xff]  ;;  %v218_v26 = vld [vmem:[%s4199_s4] sm:$0xff]  ;;  %v219_v27 = vld [vmem:[%s4199_s4 + $0x8] sm:$0xff] }
  0x17   :  { %3055 = vmatpush3.bf16.msra.mxu1 %v3740_v3  ;;  %v3788_v28 = vpack.c.bf16 %v219_v27, %v218_v26  ;;  %v3795_v31 = vld [vmem:[%s4199_s4 + $0x10] sm:$0xff]  ;;  %v221_v35 = vld [vmem:[%s4202_s7] sm:$0x7] }
  0x18   :  { %2593 = vmatmul.mubr.msk.f32.gmra.mrb[6].mxu0 %vm46_vm3, %v33_v42  ;;  %3056 = vmatprep.subr.bf16.mxu1 %v3491_v4  ;;  %v3805_v38 = vrot.slane %v221_v35, %v224_v34  ;;  %v3820_v46 = vrot.slane %v221_v35, %v228_v45  ;;  %v2484_v47 = vld [vmem:[%s4201_s6] sm:$0xff] }
  0x19   :  { %166 = vmatprep.mubr.f32.mxu0 %v3489_v12  ;;  %3046 = vmatpush1.bf16.msra.mxu0 %v3667_v43 }
  0x1a   :  { %3049 = vmatprep.subr.msk.bf16.mxu0 %vm3679_vm5, %v3670_v44 }
  0x1b   :  { %3058 = vmatpush3.bf16.msra.mxu1 %v3751_v7 }
  0x1c   :  { %2594 = vmatmul.mubr.msk.f32.gmra.mrb[8].mxu0 %vm46_vm3, %v34_v48  ;;  %3059 = vmatprep.subr.bf16.mxu1 %v3491_v4 }
  0x1d   :  { %172 = vmatprep.mubr.f32.mxu0 %v3489_v12  ;;  %3052 = vmatpush1.bf16.msk.msra.mxu0 %vm3679_vm5, %v3689_v49 }
  0x1e   :  { %3066 = vmatprep.subr.bf16.mxu0 %v3579_v16 }
  0x1f   :  { %3061 = vmatpush3.bf16.msra.mxu1 %v3762_v10 }
  0x20   :  { %2595 = vmatmul.mubr.msk.f32.gmra.mrb[10].mxu0 %vm46_vm3, %v35_v50  ;;  %2795 = vmatprep.subr.mxu1 %v3489_v12 }
  0x21   :  { %178 = vmatprep.mubr.f32.mxu0 %v3489_v12 }
  0x23   :  { %2796 = vmatpush3.msra.mxu1 %v3770_v14 }
  0x24   :  { %2596 = vmatmul.mubr.msk.f32.gmra.mrb[12].mxu0 %vm46_vm3, %v36_v51  ;;  %3062 = vmatprep.subr.bf16.mxu1 %v3491_v4 }
  0x25   :  { %184 = vmatprep.mubr.f32.mxu0 %v3489_v12 }
  0x28   :  { %2597 = vmatmul.mubr.msk.f32.gmra.mrb[14].mxu0 %vm46_vm3, %v37_v52 }
  0x29   :  { %309 = vmatprep.mubr.f32.mxu0 %v3489_v12 }
  0x2c   :  { %310 = vmatmul.mubr.f32.vlgmr.msra.gmra.mrb[0].mxu0 %v3489_v12 }
  0x2d   :  { %3068 = vmatpush1.bf16.msra.mxu0 %v3598_v22  ;;  %581 = vmatprep.mubr.f32.mxu0 %v3489_v12 }
  0x2e   :  { %3070 = vmatprep.subr.bf16.mxu0 %v3601_v23 }
  0x31   :  { %3072 = vmatpush1.bf16.msra.mxu0 %v3621_v29 }
  0x32   :  { %3074 = vmatprep.subr.bf16.mxu0 %v3624_v30 }
  0x35   :  { %3076 = vmatpush1.bf16.msra.mxu0 %v3644_v36 }
  0x36   :  { %3078 = vmatprep.subr.bf16.mxu0 %v3647_v37 }
  0x39   :  { %3080 = vmatpush1.bf16.msra.mxu0 %v3667_v43 }
  0x3a   :  { %3083 = vmatprep.subr.msk.bf16.mxu0 %vm3679_vm5, %v3670_v44 }
  0x3d   :  { %3086 = vmatpush1.bf16.msk.msra.mxu0 %vm3679_vm5, %v3689_v49 }
  0x3e   :  { %3100 = vmatprep.subr.bf16.mxu0 %v3579_v16 }
  0xff   :  { %v311_v53 = vpop.f32.mrb[0].mxu0 }
 0x100   :  { %v2600_v54 = vmul.f32 -1.442695, %v311_v53  ;;  %v313_v55 = vpop.f32.mrb[1].mxu0 }
 0x101   :  { %v2601_v56 = vmul.f32 -1.442695, %v313_v55 }
 0x102   :  { %3346 = vpow2.f32 %v2600_v54 }
 0x103   :  { %3348 = vpow2.f32 %v2601_v56 }
 0x10c   :  { %v3347_v57 = vpop.eup %3346 }
 0x10d   :  { %v3349_v58 = vpop.eup %3348  ;;  %v324_v59 = vadd.f32 1.0, %v3347_v57 }
 0x10e   :  { %v325_v60 = vadd.f32 1.0, %v3349_v58 }
 0x10f   :  { %3350 = vrcp.f32 %v324_v59 }
 0x110   :  { %3352 = vrcp.f32 %v325_v60 }
 0x119   :  { %v3351_v61 = vpop.eup %3350 }
 0x11a   :  { %v3353_v62 = vpop.eup %3352  ;;  %346 = vrot.lane.b32.xlu1 %v3351_v61, %s3490_s0  ;;  %v332_v15 = vmul.f32 0.0, %v3351_v61 }
 0x11b   :  { %v330_v63 = vmul.f32 2.0, %v3353_v62 }
 0x11d   :  { %v2602_v0 = vadd.f32 -1.0, %v330_v63 }
 0x11e   :  { %348 = vrot.lane.b32.xlu1 %v3353_v62, %s3490_s0 }
 0x11f   :  { %334 = vrot.lane.b32.xlu0 %v2602_v0, %s3490_s0 }
 0x18c   :  { %v347_v19 = vpop.permute.xlu1 %346 }
 0x190   :  { %v349_v20 = vpop.permute.xlu1 %348 }
 0x191   :  { %v335_v11 = vpop.permute.xlu0 %334  ;;  %v351_v24 = vsel %vm350_vm7, %v347_v19, %v349_v20 }
 0x192   :  { %v337_v13 = vmul.f32 %v3351_v61, %v335_v11 }
 0x194   :  { %339 = vrot.lane.b32.xlu0 %v337_v13, %s3493_s21 }
 0x206   :  { %v340_v17 = vpop.permute.xlu0 %339 }
 0x207   :  { %v3775_v18 = vadd.f32 %v340_v17, %v332_v15 }
 0x209   :  { %3354 = vtanh.f32 %v3775_v18 }
 0x213   :  { %v3355_v21 = vpop.eup %3354 }
 0x214   :  { %v353_v25 = vmul.f32 %v3355_v21, %v351_v24 }
 0x216   :  { %2798 = vmatmul.mubr.msk.f32.vlgmr.msra.gmra.mrb[0].mxu1 %vm354_vm8, %v353_v25 }
 0x217   :  { %2806 = vmatprep.mubr.msk.f32.mxu1 %vm3492_vm6, %v3489_v12  ;;  %3064 = vmatpush3.bf16.msra.mxu1 %v3788_v28 }
 0x218   :  { %2804 = vmatprep.subr.mxu1 %v3489_v12 }
 0x21b   :  { %2805 = vmatpush3.msra.mxu1 %v3795_v31 }
 0x21c   :  { %3087 = vmatprep.subr.bf16.mxu1 %v3491_v4 }
 0x2e9   :  { %v424_v39 = vpop.f32.mrb[0].mxu1 }
 0x2ea   :  { %v425_v40 = vadd.f32 %v424_v39, %v3805_v38  ;;  %v2799_v41 = vpop.f32.mrb[1].mxu1 }
 0x2ec   :  { %v428_v42 = vmax.f32 %v425_v40, 0.0 }
 0x2ee   :  { %2807 = vmatmul.mubr.msk.f32.vlgmr.msra.gmra.mrb[2].mxu1 %vm429_vm9, %v428_v42 }
 0x2ef   :  { %3089 = vmatpush3.bf16.msra.mxu1 %v3740_v3  ;;  %2823 = vmatprep.mubr.msk.f32.mxu1 %vm3492_vm6, %v3489_v12 }
 0x2f0   :  { %3090 = vmatprep.subr.bf16.mxu1 %v3491_v4 }
 0x2f3   :  { %3092 = vmatpush3.bf16.msra.mxu1 %v3751_v7 }
 0x2f4   :  { %3093 = vmatprep.subr.bf16.mxu1 %v3491_v4 }
 0x2f7   :  { %3095 = vmatpush3.bf16.msra.mxu1 %v3762_v10 }
 0x2f8   :  { %2821 = vmatprep.subr.mxu1 %v3489_v12 }
 0x2fb   :  { %2822 = vmatpush3.msra.mxu1 %v3770_v14 }
 0x2fc   :  { %3096 = vmatprep.subr.bf16.mxu1 %v3491_v4 }
 0x3c1   :  { %v499_v48 = vpop.f32.mrb[2].mxu1 }
 0x3c2   :  { %v500_v50 = vadd.f32 %v499_v48, %v3820_v46  ;;  %v2808_v51 = vpop.f32.mrb[3].mxu1 }
 0x3c4   :  { %v2605_v52 = vmul.f32 -1.442695, %v500_v50 }
 0x3c6   :  { %3356 = vpow2.f32 %v2605_v52 }
 0x3d0   :  { %v3357_v53 = vpop.eup %3356 }
 0x3d1   :  { %v506_v54 = vadd.f32 1.0, %v3357_v53 }
 0x3d3   :  { %3358 = vrcp.f32 %v506_v54 }
 0x3dd   :  { %v3359_v55 = vpop.eup %3358 }
 0x3de   :  { %510 = vrot.lane.b32.xlu0 %v3359_v55, %s3494_s27 }
 0x450   :  { %v511_v56 = vpop.permute.xlu0 %510 }
 0x451   :  { %v513_v57 = vsel %vm354_vm8, %v353_v25, %v511_v56 }
 0x452   :  { %2608 = vmatmul.mubr.msk.f32.vlgmr.msra.gmra.mrb[2].mxu0 %vm234_vm10, %v513_v57 }
 0x453   :  { %3102 = vmatpush1.bf16.msra.mxu0 %v3598_v22  ;;  %850 = vmatprep.mubr.f32.mxu0 %v3489_v12 }
 0x454   :  { %3104 = vmatprep.subr.bf16.mxu0 %v3601_v23 }
 0x457   :  { %3106 = vmatpush1.bf16.msra.mxu0 %v3621_v29 }
 0x458   :  { %3108 = vmatprep.subr.bf16.mxu0 %v3624_v30 }
 0x45b   :  { %3110 = vmatpush1.bf16.msra.mxu0 %v3644_v36 }
 0x45c   :  { %3112 = vmatprep.subr.bf16.mxu0 %v3647_v37 }
 0x45f   :  { %3114 = vmatpush1.bf16.msra.mxu0 %v3667_v43 }
 0x460   :  { %3117 = vmatprep.subr.msk.bf16.mxu0 %vm3679_vm5, %v3670_v44 }
 0x463   :  { %3120 = vmatpush1.bf16.msk.msra.mxu0 %vm3679_vm5, %v3689_v49 }
 0x464   :  { %3134 = vmatprep.subr.bf16.mxu0 %v3579_v16 }
 0x525   :  { %v583_v58 = vpop.f32.mrb[2].mxu0 }
 0x526   :  { %v585_v59 = vpop.f32.mrb[3].mxu0  ;;  %v2609_v61 = vmul.f32 -1.442695, %v583_v58 }
 0x527   :  { %v2610_v60 = vmul.f32 -1.442695, %v585_v59 }
 0x529   :  { %3360 = vpow2.f32 %v2610_v60 }
 0x52a   :  { %3362 = vpow2.f32 %v2609_v61 }
 0x533   :  { %v3361_v62 = vpop.eup %3360 }
 0x534   :  { %v597_v63 = vadd.f32 1.0, %v3361_v62  ;;  %v3363_v0 = vpop.eup %3362 }
 0x535   :  { %v596_v1 = vadd.f32 1.0, %v3363_v0 }
 0x536   :  { %3364 = vrcp.f32 %v597_v63 }
 0x537   :  { %3366 = vrcp.f32 %v596_v1 }
 0x540   :  { %v3365_v2 = vpop.eup %3364 }
 0x541   :  { %v602_v5 = vmul.f32 2.0, %v3365_v2  ;;  %v3367_v8 = vpop.eup %3366 }
 0x542   :  { %v604_v13 = vmul.f32 %v3367_v8, %v3775_v18 }
 0x543   :  { %v2611_v6 = vadd.f32 -1.0, %v602_v5 }
 0x545   :  { %606 = vrot.lane.b32.xlu1 %v2611_v6, %s3490_s0 }
 0x549   :  { %618 = vrot.lane.b32.xlu1 %v3367_v8, %s3490_s0 }
 0x5b7   :  { %v607_v9 = vpop.permute.xlu1 %606 }
 0x5b8   :  { %v609_v11 = vmul.f32 %v3367_v8, %v607_v9 }
 0x5ba   :  { %611 = vrot.lane.b32.xlu0 %v609_v11, %s3493_s21 }
 0x5bb   :  { %v619_v20 = vpop.permute.xlu1 %618 }
 0x5be   :  { %620 = vrot.lane.b32.xlu0 %v3365_v2, %s3490_s0 }
 0x62c   :  { %v612_v15 = vpop.permute.xlu0 %611 }
 0x62d   :  { %v3846_v17 = vadd.f32 %v612_v15, %v604_v13 }
 0x62f   :  { %3368 = vtanh.f32 %v3846_v17 }
 0x630   :  { %v621_v19 = vpop.permute.xlu0 %620 }
 0x631   :  { %v622_v24 = vsel %vm350_vm7, %v619_v20, %v621_v19 }
 0x639   :  { %v3369_v21 = vpop.eup %3368 }
 0x63a   :  { %v624_v25 = vmul.f32 %v3369_v21, %v622_v24 }
 0x63c   :  { %2824 = vmatmul.mubr.msk.f32.vlgmr.msra.gmra.mrb[4].mxu1 %vm354_vm8, %v624_v25 }
 0x63d   :  { %3098 = vmatpush3.bf16.msra.mxu1 %v3788_v28  ;;  %2832 = vmatprep.mubr.msk.f32.mxu1 %vm3492_vm6, %v3489_v12 }
 0x63e   :  { %2830 = vmatprep.subr.mxu1 %v3489_v12 }
 0x641   :  { %2831 = vmatpush3.msra.mxu1 %v3795_v31 }
 0x642   :  { %3121 = vmatprep.subr.bf16.mxu1 %v3491_v4 }
 0x70f   :  { %v694_v18 = vpop.f32.mrb[4].mxu1 }
 0x710   :  { %v695_v26 = vadd.f32 %v694_v18, %v3805_v38  ;;  %v2825_v27 = vpop.f32.mrb[5].mxu1 }
 0x712   :  { %v698_v32 = vmax.f32 %v695_v26, 0.0 }
 0x714   :  { %2833 = vmatmul.mubr.msk.f32.vlgmr.msra.gmra.mrb[6].mxu1 %vm429_vm9, %v698_v32 }
 0x715   :  { %3123 = vmatpush3.bf16.msra.mxu1 %v3740_v3  ;;  %2849 = vmatprep.mubr.msk.f32.mxu1 %vm3492_vm6, %v3489_v12 }
 0x716   :  { %3124 = vmatprep.subr.bf16.mxu1 %v3491_v4 }
 0x719   :  { %3126 = vmatpush3.bf16.msra.mxu1 %v3751_v7 }
 0x71a   :  { %3127 = vmatprep.subr.bf16.mxu1 %v3491_v4 }
 0x71d   :  { %3129 = vmatpush3.bf16.msra.mxu1 %v3762_v10 }
 0x71e   :  { %2847 = vmatprep.subr.mxu1 %v3489_v12 }
 0x721   :  { %2848 = vmatpush3.msra.mxu1 %v3770_v14 }
 0x722   :  { %3130 = vmatprep.subr.bf16.mxu1 %v3491_v4 }
 0x7e7   :  { %v768_v34 = vpop.f32.mrb[6].mxu1 }
 0x7e8   :  { %v769_v35 = vadd.f32 %v768_v34, %v3820_v46  ;;  %v2834_v39 = vpop.f32.mrb[7].mxu1 }
 0x7ea   :  { %v2614_v40 = vmul.f32 -1.442695, %v769_v35 }
 0x7ec   :  { %3370 = vpow2.f32 %v2614_v40 }
 0x7f6   :  { %v3371_v41 = vpop.eup %3370 }
 0x7f7   :  { %v775_v42 = vadd.f32 1.0, %v3371_v41 }
 0x7f9   :  { %3372 = vrcp.f32 %v775_v42 }
 0x803   :  { %v3373_v45 = vpop.eup %3372 }
 0x804   :  { %779 = vrot.lane.b32.xlu1 %v3373_v45, %s3494_s27 }
 0x876   :  { %v780_v48 = vpop.permute.xlu1 %779 }
 0x877   :  { %v782_v50 = vsel %vm354_vm8, %v624_v25, %v780_v48 }
 0x878   :  { %2617 = vmatmul.mubr.msk.f32.vlgmr.msra.gmra.mrb[4].mxu0 %vm234_vm10, %v782_v50 }
 0x879   :  { %3136 = vmatpush1.bf16.msra.mxu0 %v3598_v22  ;;  %1119 = vmatprep.mubr.f32.mxu0 %v3489_v12 }
 0x87a   :  { %3138 = vmatprep.subr.bf16.mxu0 %v3601_v23 }
 0x87d   :  { %3140 = vmatpush1.bf16.msra.mxu0 %v3621_v29 }
 0x87e   :  { %3142 = vmatprep.subr.bf16.mxu0 %v3624_v30 }
 0x881   :  { %3144 = vmatpush1.bf16.msra.mxu0 %v3644_v36 }
 0x882   :  { %3146 = vmatprep.subr.bf16.mxu0 %v3647_v37 }
 0x885   :  { %3148 = vmatpush1.bf16.msra.mxu0 %v3667_v43 }
 0x886   :  { %3151 = vmatprep.subr.msk.bf16.mxu0 %vm3679_vm5, %v3670_v44 }
 0x889   :  { %3154 = vmatpush1.bf16.msk.msra.mxu0 %vm3679_vm5, %v3689_v49 }
 0x88a   :  { %3168 = vmatprep.subr.bf16.mxu0 %v3579_v16 }
 0x94b   :  { %v852_v51 = vpop.f32.mrb[4].mxu0 }
 0x94c   :  { %v854_v52 = vpop.f32.mrb[5].mxu0  ;;  %v2618_v54 = vmul.f32 -1.442695, %v852_v51 }
 0x94d   :  { %v2619_v53 = vmul.f32 -1.442695, %v854_v52 }
 0x94f   :  { %3374 = vpow2.f32 %v2619_v53 }
 0x950   :  { %3376 = vpow2.f32 %v2618_v54 }
 0x959   :  { %v3375_v55 = vpop.eup %3374 }
 0x95a   :  { %v866_v56 = vadd.f32 1.0, %v3375_v55  ;;  %v3377_v57 = vpop.eup %3376 }
 0x95b   :  { %v865_v58 = vadd.f32 1.0, %v3377_v57 }
 0x95c   :  { %3378 = vrcp.f32 %v866_v56 }
 0x95d   :  { %3380 = vrcp.f32 %v865_v58 }
 0x966   :  { %v3379_v59 = vpop.eup %3378 }
 0x967   :  { %v871_v60 = vmul.f32 2.0, %v3379_v59  ;;  %v3381_v62 = vpop.eup %3380 }
 0x968   :  { %v873_v1 = vmul.f32 %v3381_v62, %v3846_v17 }
 0x969   :  { %v2620_v61 = vadd.f32 -1.0, %v871_v60 }
 0x96b   :  { %875 = vrot.lane.b32.xlu0 %v2620_v61, %s3490_s0 }
 0x96f   :  { %887 = vrot.lane.b32.xlu0 %v3381_v62, %s3490_s0 }
 0x9dd   :  { %v876_v63 = vpop.permute.xlu0 %875 }
 0x9de   :  { %v878_v0 = vmul.f32 %v3381_v62, %v876_v63 }
 0x9e0   :  { %880 = vrot.lane.b32.xlu1 %v878_v0, %s3493_s21 }
 0x9e1   :  { %v888_v8 = vpop.permute.xlu0 %887 }
 0x9e4   :  { %889 = vrot.lane.b32.xlu1 %v3379_v59, %s3490_s0 }
 0xa52   :  { %v881_v2 = vpop.permute.xlu1 %880 }
 0xa53   :  { %v3893_v5 = vadd.f32 %v881_v2, %v873_v1 }
 0xa55   :  { %3382 = vtanh.f32 %v3893_v5 }
 0xa56   :  { %v890_v6 = vpop.permute.xlu1 %889 }
 0xa57   :  { %v891_v11 = vsel %vm350_vm7, %v888_v8, %v890_v6 }
 0xa5f   :  { %v3383_v9 = vpop.eup %3382 }
 0xa60   :  { %v893_v13 = vmul.f32 %v3383_v9, %v891_v11 }
 0xa62   :  { %2850 = vmatmul.mubr.msk.f32.vlgmr.msra.gmra.mrb[8].mxu1 %vm354_vm8, %v893_v13 }
 0xa63   :  { %3132 = vmatpush3.bf16.msra.mxu1 %v3788_v28  ;;  %2858 = vmatprep.mubr.msk.f32.mxu1 %vm3492_vm6, %v3489_v12 }
 0xa64   :  { %2856 = vmatprep.subr.mxu1 %v3489_v12 }
 0xa67   :  { %2857 = vmatpush3.msra.mxu1 %v3795_v31 }
 0xa68   :  { %3155 = vmatprep.subr.bf16.mxu1 %v3491_v4 }
 0xb35   :  { %v963_v15 = vpop.f32.mrb[8].mxu1 }
 0xb36   :  { %v964_v17 = vadd.f32 %v963_v15, %v3805_v38  ;;  %v2851_v19 = vpop.f32.mrb[9].mxu1 }
 0xb38   :  { %v967_v20 = vmax.f32 %v964_v17, 0.0 }
 0xb3a   :  { %2859 = vmatmul.mubr.msk.f32.vlgmr.msra.gmra.mrb[10].mxu1 %vm429_vm9, %v967_v20 }
 0xb3b   :  { %3157 = vmatpush3.bf16.msra.mxu1 %v3740_v3  ;;  %2875 = vmatprep.mubr.msk.f32.mxu1 %vm3492_vm6, %v3489_v12 }
 0xb3c   :  { %3158 = vmatprep.subr.bf16.mxu1 %v3491_v4 }
 0xb3f   :  { %3160 = vmatpush3.bf16.msra.mxu1 %v3751_v7 }
 0xb40   :  { %3161 = vmatprep.subr.bf16.mxu1 %v3491_v4 }
 0xb43   :  { %3163 = vmatpush3.bf16.msra.mxu1 %v3762_v10 }
 0xb44   :  { %2873 = vmatprep.subr.mxu1 %v3489_v12 }
 0xb47   :  { %2874 = vmatpush3.msra.mxu1 %v3770_v14 }
 0xb48   :  { %3164 = vmatprep.subr.bf16.mxu1 %v3491_v4 }
 0xc0d   :  { %v1037_v21 = vpop.f32.mrb[10].mxu1 }
 0xc0e   :  { %v1038_v24 = vadd.f32 %v1037_v21, %v3820_v46  ;;  %v2860_v25 = vpop.f32.mrb[11].mxu1 }
 0xc10   :  { %v2623_v18 = vmul.f32 -1.442695, %v1038_v24 }
 0xc12   :  { %3384 = vpow2.f32 %v2623_v18 }
 0xc1c   :  { %v3385_v26 = vpop.eup %3384 }
 0xc1d   :  { %v1044_v27 = vadd.f32 1.0, %v3385_v26 }
 0xc1f   :  { %3386 = vrcp.f32 %v1044_v27 }
 0xc29   :  { %v3387_v32 = vpop.eup %3386 }
 0xc2a   :  { %1048 = vrot.lane.b32.xlu0 %v3387_v32, %s3494_s27 }
 0xc9c   :  { %v1049_v34 = vpop.permute.xlu0 %1048 }
 0xc9d   :  { %v1051_v35 = vsel %vm354_vm8, %v893_v13, %v1049_v34 }
 0xc9e   :  { %2626 = vmatmul.mubr.msk.f32.vlgmr.msra.gmra.mrb[6].mxu0 %vm234_vm10, %v1051_v35 }
 0xc9f   :  { %3170 = vmatpush1.bf16.msra.mxu0 %v3598_v22  ;;  %1388 = vmatprep.mubr.f32.mxu0 %v3489_v12 }
 0xca0   :  { %3172 = vmatprep.subr.bf16.mxu0 %v3601_v23 }
 0xca3   :  { %3174 = vmatpush1.bf16.msra.mxu0 %v3621_v29 }
 0xca4   :  { %3176 = vmatprep.subr.bf16.mxu0 %v3624_v30 }
 0xca7   :  { %3178 = vmatpush1.bf16.msra.mxu0 %v3644_v36 }
 0xca8   :  { %3180 = vmatprep.subr.bf16.mxu0 %v3647_v37 }
 0xcab   :  { %3182 = vmatpush1.bf16.msra.mxu0 %v3667_v43 }
 0xcac   :  { %3185 = vmatprep.subr.msk.bf16.mxu0 %vm3679_vm5, %v3670_v44 }
 0xcaf   :  { %3188 = vmatpush1.bf16.msk.msra.mxu0 %vm3679_vm5, %v3689_v49 }
 0xcb0   :  { %3202 = vmatprep.subr.bf16.mxu0 %v3579_v16 }
 0xd71   :  { %v1121_v39 = vpop.f32.mrb[6].mxu0 }
 0xd72   :  { %v1123_v40 = vpop.f32.mrb[7].mxu0  ;;  %v2627_v42 = vmul.f32 -1.442695, %v1121_v39 }
 0xd73   :  { %v2628_v41 = vmul.f32 -1.442695, %v1123_v40 }
 0xd75   :  { %3388 = vpow2.f32 %v2628_v41 }
 0xd76   :  { %3390 = vpow2.f32 %v2627_v42 }
 0xd7f   :  { %v3389_v45 = vpop.eup %3388 }
 0xd80   :  { %v1135_v48 = vadd.f32 1.0, %v3389_v45  ;;  %v3391_v50 = vpop.eup %3390 }
 0xd81   :  { %v1134_v51 = vadd.f32 1.0, %v3391_v50 }
 0xd82   :  { %3392 = vrcp.f32 %v1135_v48 }
 0xd83   :  { %3394 = vrcp.f32 %v1134_v51 }
 0xd8c   :  { %v3393_v52 = vpop.eup %3392 }
 0xd8d   :  { %v1140_v53 = vmul.f32 2.0, %v3393_v52  ;;  %v3395_v55 = vpop.eup %3394 }
 0xd8e   :  { %v1142_v58 = vmul.f32 %v3395_v55, %v3893_v5 }
 0xd8f   :  { %v2629_v54 = vadd.f32 -1.0, %v1140_v53 }
 0xd91   :  { %1144 = vrot.lane.b32.xlu1 %v2629_v54, %s3490_s0 }
 0xd95   :  { %1156 = vrot.lane.b32.xlu1 %v3395_v55, %s3490_s0 }
 0xe03   :  { %v1145_v56 = vpop.permute.xlu1 %1144 }
 0xe04   :  { %v1147_v57 = vmul.f32 %v3395_v55, %v1145_v56 }
 0xe06   :  { %1149 = vrot.lane.b32.xlu0 %v1147_v57, %s3493_s21 }
 0xe07   :  { %v1157_v62 = vpop.permute.xlu1 %1156 }
 0xe0a   :  { %1158 = vrot.lane.b32.xlu0 %v3393_v52, %s3490_s0 }
 0xe78   :  { %v1150_v59 = vpop.permute.xlu0 %1149 }
 0xe79   :  { %v3940_v60 = vadd.f32 %v1150_v59, %v1142_v58 }
 0xe7b   :  { %3396 = vtanh.f32 %v3940_v60 }
 0xe7c   :  { %v1159_v61 = vpop.permute.xlu0 %1158 }
 0xe7d   :  { %v1160_v0 = vsel %vm350_vm7, %v1157_v62, %v1159_v61 }
 0xe85   :  { %v3397_v63 = vpop.eup %3396 }
 0xe86   :  { %v1162_v1 = vmul.f32 %v3397_v63, %v1160_v0 }
 0xe88   :  { %2876 = vmatmul.mubr.msk.f32.vlgmr.msra.gmra.mrb[12].mxu1 %vm354_vm8, %v1162_v1 }
 0xe89   :  { %3166 = vmatpush3.bf16.msra.mxu1 %v3788_v28  ;;  %2884 = vmatprep.mubr.msk.f32.mxu1 %vm3492_vm6, %v3489_v12 }
 0xe8a   :  { %2882 = vmatprep.subr.mxu1 %v3489_v12 }
 0xe8d   :  { %2883 = vmatpush3.msra.mxu1 %v3795_v31 }
 0xe8e   :  { %3189 = vmatprep.subr.bf16.mxu1 %v3491_v4 }
 0xf5b   :  { %v1232_v2 = vpop.f32.mrb[12].mxu1 }
 0xf5c   :  { %v1233_v5 = vadd.f32 %v1232_v2, %v3805_v38  ;;  %v2877_v6 = vpop.f32.mrb[13].mxu1 }
 0xf5e   :  { %v1236_v8 = vmax.f32 %v1233_v5, 0.0 }
 0xf60   :  { %2885 = vmatmul.mubr.msk.f32.vlgmr.msra.gmra.mrb[14].mxu1 %vm429_vm9, %v1236_v8 }
 0xf61   :  { %3191 = vmatpush3.bf16.msra.mxu1 %v3740_v3  ;;  %2901 = vmatprep.mubr.msk.f32.mxu1 %vm3492_vm6, %v3489_v12 }
 0xf62   :  { %3192 = vmatprep.subr.bf16.mxu1 %v3491_v4 }
 0xf65   :  { %3194 = vmatpush3.bf16.msra.mxu1 %v3751_v7 }
 0xf66   :  { %3195 = vmatprep.subr.bf16.mxu1 %v3491_v4 }
 0xf69   :  { %3197 = vmatpush3.bf16.msra.mxu1 %v3762_v10 }
 0xf6a   :  { %2899 = vmatprep.subr.mxu1 %v3489_v12 }
 0xf6d   :  { %2900 = vmatpush3.msra.mxu1 %v3770_v14 }
 0xf6e   :  { %3198 = vmatprep.subr.bf16.mxu1 %v3491_v4 }
0x1033   :  { %v1306_v9 = vpop.f32.mrb[14].mxu1 }
0x1034   :  { %v1307_v11 = vadd.f32 %v1306_v9, %v3820_v46  ;;  %v2886_v13 = vpop.f32.mrb[15].mxu1 }
0x1036   :  { %v2632_v15 = vmul.f32 -1.442695, %v1307_v11 }
0x1038   :  { %3398 = vpow2.f32 %v2632_v15 }
0x1042   :  { %v3399_v17 = vpop.eup %3398 }
0x1043   :  { %v1313_v19 = vadd.f32 1.0, %v3399_v17 }
0x1045   :  { %3400 = vrcp.f32 %v1313_v19 }
0x104f   :  { %v3401_v20 = vpop.eup %3400 }
0x1050   :  { %1317 = vrot.lane.b32.xlu1 %v3401_v20, %s3494_s27 }
0x10c2   :  { %v1318_v21 = vpop.permute.xlu1 %1317 }
0x10c3   :  { %v1320_v24 = vsel %vm354_vm8, %v1162_v1, %v1318_v21 }
0x10c4   :  { %2635 = vmatmul.mubr.msk.f32.vlgmr.msra.gmra.mrb[8].mxu0 %vm234_vm10, %v1320_v24 }
0x10c5   :  { %3204 = vmatpush1.bf16.msra.mxu0 %v3598_v22  ;;  %1657 = vmatprep.mubr.f32.mxu0 %v3489_v12 }
0x10c6   :  { %3206 = vmatprep.subr.bf16.mxu0 %v3601_v23 }
0x10c9   :  { %3208 = vmatpush1.bf16.msra.mxu0 %v3621_v29 }
0x10ca   :  { %3210 = vmatprep.subr.bf16.mxu0 %v3624_v30 }
0x10cd   :  { %3212 = vmatpush1.bf16.msra.mxu0 %v3644_v36 }
0x10ce   :  { %3214 = vmatprep.subr.bf16.mxu0 %v3647_v37 }
0x10d1   :  { %3216 = vmatpush1.bf16.msra.mxu0 %v3667_v43 }
0x10d2   :  { %3219 = vmatprep.subr.msk.bf16.mxu0 %vm3679_vm5, %v3670_v44 }
0x10d5   :  { %3222 = vmatpush1.bf16.msk.msra.mxu0 %vm3679_vm5, %v3689_v49 }
0x10d6   :  { %3236 = vmatprep.subr.bf16.mxu0 %v3579_v16 }
0x1197   :  { %v1390_v25 = vpop.f32.mrb[8].mxu0 }
0x1198   :  { %v1392_v18 = vpop.f32.mrb[9].mxu0  ;;  %v2636_v27 = vmul.f32 -1.442695, %v1390_v25 }
0x1199   :  { %v2637_v26 = vmul.f32 -1.442695, %v1392_v18 }
0x119b   :  { %3402 = vpow2.f32 %v2637_v26 }
0x119c   :  { %3404 = vpow2.f32 %v2636_v27 }
0x11a5   :  { %v3403_v32 = vpop.eup %3402 }
0x11a6   :  { %v1404_v34 = vadd.f32 1.0, %v3403_v32  ;;  %v3405_v35 = vpop.eup %3404 }
0x11a7   :  { %v1403_v39 = vadd.f32 1.0, %v3405_v35 }
0x11a8   :  { %3406 = vrcp.f32 %v1404_v34 }
0x11a9   :  { %3408 = vrcp.f32 %v1403_v39 }
0x11b2   :  { %v3407_v40 = vpop.eup %3406 }
0x11b3   :  { %v1409_v41 = vmul.f32 2.0, %v3407_v40  ;;  %v3409_v45 = vpop.eup %3408 }
0x11b4   :  { %v1411_v51 = vmul.f32 %v3409_v45, %v3940_v60 }
0x11b5   :  { %v2638_v42 = vadd.f32 -1.0, %v1409_v41 }
0x11b7   :  { %1413 = vrot.lane.b32.xlu0 %v2638_v42, %s3490_s0 }
0x11bb   :  { %1425 = vrot.lane.b32.xlu0 %v3409_v45, %s3490_s0 }
0x1229   :  { %v1414_v48 = vpop.permute.xlu0 %1413 }
0x122a   :  { %v1416_v50 = vmul.f32 %v3409_v45, %v1414_v48 }
0x122c   :  { %1418 = vrot.lane.b32.xlu1 %v1416_v50, %s3493_s21 }
0x122d   :  { %v1426_v55 = vpop.permute.xlu0 %1425 }
0x1230   :  { %1427 = vrot.lane.b32.xlu1 %v3407_v40, %s3490_s0 }
0x129e   :  { %v1419_v52 = vpop.permute.xlu1 %1418 }
0x129f   :  { %v3987_v53 = vadd.f32 %v1419_v52, %v1411_v51 }
0x12a1   :  { %3410 = vtanh.f32 %v3987_v53 }
0x12a2   :  { %v1428_v54 = vpop.permute.xlu1 %1427 }
0x12a3   :  { %v1429_v57 = vsel %vm350_vm7, %v1426_v55, %v1428_v54 }
0x12ab   :  { %v3411_v56 = vpop.eup %3410 }
0x12ac   :  { %v1431_v58 = vmul.f32 %v3411_v56, %v1429_v57 }
0x12ae   :  { %2902 = vmatmul.mubr.msk.f32.vlgmr.msra.gmra.mrb[16].mxu1 %vm354_vm8, %v1431_v58 }
0x12af   :  { %3200 = vmatpush3.bf16.msra.mxu1 %v3788_v28  ;;  %2910 = vmatprep.mubr.msk.f32.mxu1 %vm3492_vm6, %v3489_v12 }
0x12b0   :  { %2908 = vmatprep.subr.mxu1 %v3489_v12 }
0x12b3   :  { %2909 = vmatpush3.msra.mxu1 %v3795_v31 }
0x12b4   :  { %3223 = vmatprep.subr.bf16.mxu1 %v3491_v4 }
0x1381   :  { %v1501_v59 = vpop.f32.mrb[16].mxu1 }
0x1382   :  { %v1502_v60 = vadd.f32 %v1501_v59, %v3805_v38  ;;  %v2903_v61 = vpop.f32.mrb[17].mxu1 }
0x1384   :  { %v1505_v62 = vmax.f32 %v1502_v60, 0.0 }
0x1386   :  { %2911 = vmatmul.mubr.msk.f32.vlgmr.msra.gmra.mrb[18].mxu1 %vm429_vm9, %v1505_v62 }
0x1387   :  { %3225 = vmatpush3.bf16.msra.mxu1 %v3740_v3  ;;  %2927 = vmatprep.mubr.msk.f32.mxu1 %vm3492_vm6, %v3489_v12 }
0x1388   :  { %3226 = vmatprep.subr.bf16.mxu1 %v3491_v4 }
0x138b   :  { %3228 = vmatpush3.bf16.msra.mxu1 %v3751_v7 }
0x138c   :  { %3229 = vmatprep.subr.bf16.mxu1 %v3491_v4 }
0x138f   :  { %3231 = vmatpush3.bf16.msra.mxu1 %v3762_v10 }
0x1390   :  { %2925 = vmatprep.subr.mxu1 %v3489_v12 }
0x1393   :  { %2926 = vmatpush3.msra.mxu1 %v3770_v14 }
0x1394   :  { %3232 = vmatprep.subr.bf16.mxu1 %v3491_v4 }
0x1459   :  { %v1575_v63 = vpop.f32.mrb[18].mxu1 }
0x145a   :  { %v1576_v0 = vadd.f32 %v1575_v63, %v3820_v46  ;;  %v2912_v1 = vpop.f32.mrb[19].mxu1 }
0x145c   :  { %v2641_v2 = vmul.f32 -1.442695, %v1576_v0 }
0x145e   :  { %3412 = vpow2.f32 %v2641_v2 }
0x1468   :  { %v3413_v5 = vpop.eup %3412 }
0x1469   :  { %v1582_v6 = vadd.f32 1.0, %v3413_v5 }
0x146b   :  { %3414 = vrcp.f32 %v1582_v6 }
0x1475   :  { %v3415_v8 = vpop.eup %3414 }
0x1476   :  { %1586 = vrot.lane.b32.xlu0 %v3415_v8, %s3494_s27 }
0x14e8   :  { %v1587_v9 = vpop.permute.xlu0 %1586 }
0x14e9   :  { %v1589_v11 = vsel %vm354_vm8, %v1431_v58, %v1587_v9 }
0x14ea   :  { %2644 = vmatmul.mubr.msk.f32.vlgmr.msra.gmra.mrb[10].mxu0 %vm234_vm10, %v1589_v11 }
0x14eb   :  { %3238 = vmatpush1.bf16.msra.mxu0 %v3598_v22  ;;  %1926 = vmatprep.mubr.f32.mxu0 %v3489_v12 }
0x14ec   :  { %3240 = vmatprep.subr.bf16.mxu0 %v3601_v23 }
0x14ef   :  { %3242 = vmatpush1.bf16.msra.mxu0 %v3621_v29 }
0x14f0   :  { %3244 = vmatprep.subr.bf16.mxu0 %v3624_v30 }
0x14f3   :  { %3246 = vmatpush1.bf16.msra.mxu0 %v3644_v36 }
0x14f4   :  { %3248 = vmatprep.subr.bf16.mxu0 %v3647_v37 }
0x14f7   :  { %3250 = vmatpush1.bf16.msra.mxu0 %v3667_v43 }
0x14f8   :  { %3253 = vmatprep.subr.msk.bf16.mxu0 %vm3679_vm5, %v3670_v44 }
0x14fb   :  { %3256 = vmatpush1.bf16.msk.msra.mxu0 %vm3679_vm5, %v3689_v49 }
0x14fc   :  { %3270 = vmatprep.subr.bf16.mxu0 %v3579_v16 }
0x15bd   :  { %v1659_v13 = vpop.f32.mrb[10].mxu0 }
0x15be   :  { %v1661_v15 = vpop.f32.mrb[11].mxu0  ;;  %v2645_v19 = vmul.f32 -1.442695, %v1659_v13 }
0x15bf   :  { %v2646_v17 = vmul.f32 -1.442695, %v1661_v15 }
0x15c1   :  { %3416 = vpow2.f32 %v2646_v17 }
0x15c2   :  { %3418 = vpow2.f32 %v2645_v19 }
0x15cb   :  { %v3417_v20 = vpop.eup %3416 }
0x15cc   :  { %v1673_v21 = vadd.f32 1.0, %v3417_v20  ;;  %v3419_v24 = vpop.eup %3418 }
0x15cd   :  { %v1672_v25 = vadd.f32 1.0, %v3419_v24 }
0x15ce   :  { %3420 = vrcp.f32 %v1673_v21 }
0x15cf   :  { %3422 = vrcp.f32 %v1672_v25 }
0x15d8   :  { %v3421_v18 = vpop.eup %3420 }
0x15d9   :  { %v1678_v26 = vmul.f32 2.0, %v3421_v18  ;;  %v3423_v32 = vpop.eup %3422 }
0x15da   :  { %v1680_v35 = vmul.f32 %v3423_v32, %v3987_v53 }
0x15db   :  { %v2647_v27 = vadd.f32 -1.0, %v1678_v26 }
0x15dd   :  { %1682 = vrot.lane.b32.xlu1 %v2647_v27, %s3490_s0 }
0x15e1   :  { %1694 = vrot.lane.b32.xlu1 %v3423_v32, %s3490_s0 }
0x164f   :  { %v1683_v16 = vpop.permute.xlu1 %1682 }
0x1650   :  { %v1685_v34 = vmul.f32 %v3423_v32, %v1683_v16 }
0x1652   :  { %1687 = vrot.lane.b32.xlu0 %v1685_v34, %s3493_s21 }
0x1653   :  { %v1695_v42 = vpop.permute.xlu1 %1694 }
0x1656   :  { %1696 = vrot.lane.b32.xlu0 %v3421_v18, %s3490_s0 }
0x16c4   :  { %v1688_v39 = vpop.permute.xlu0 %1687 }
0x16c5   :  { %v4034_v40 = vadd.f32 %v1688_v39, %v1680_v35 }
0x16c7   :  { %3424 = vtanh.f32 %v4034_v40 }
0x16c8   :  { %v1697_v41 = vpop.permute.xlu0 %1696 }
0x16c9   :  { %v1698_v48 = vsel %vm350_vm7, %v1695_v42, %v1697_v41 }
0x16d1   :  { %v3425_v45 = vpop.eup %3424 }
0x16d2   :  { %v1700_v50 = vmul.f32 %v3425_v45, %v1698_v48 }
0x16d4   :  { %2928 = vmatmul.mubr.msk.f32.vlgmr.msra.gmra.mrb[20].mxu1 %vm354_vm8, %v1700_v50 }
0x16d5   :  { %3234 = vmatpush3.bf16.msra.mxu1 %v3788_v28  ;;  %2936 = vmatprep.mubr.msk.f32.mxu1 %vm3492_vm6, %v3489_v12 }
0x16d6   :  { %2934 = vmatprep.subr.mxu1 %v3489_v12 }
0x16d9   :  { %2935 = vmatpush3.msra.mxu1 %v3795_v31 }
0x16da   :  { %3257 = vmatprep.subr.bf16.mxu1 %v3491_v4 }
0x17a7   :  { %v1770_v51 = vpop.f32.mrb[20].mxu1 }
0x17a8   :  { %v1771_v52 = vadd.f32 %v1770_v51, %v3805_v38  ;;  %v2929_v53 = vpop.f32.mrb[21].mxu1 }
0x17aa   :  { %v1774_v54 = vmax.f32 %v1771_v52, 0.0 }
0x17ac   :  { %2937 = vmatmul.mubr.msk.f32.vlgmr.msra.gmra.mrb[22].mxu1 %vm429_vm9, %v1774_v54 }
0x17ad   :  { %3259 = vmatpush3.bf16.msra.mxu1 %v3740_v3  ;;  %2953 = vmatprep.mubr.msk.f32.mxu1 %vm3492_vm6, %v3489_v12 }
0x17ae   :  { %3260 = vmatprep.subr.bf16.mxu1 %v3491_v4 }
0x17b1   :  { %3262 = vmatpush3.bf16.msra.mxu1 %v3751_v7 }
0x17b2   :  { %3263 = vmatprep.subr.bf16.mxu1 %v3491_v4 }
0x17b5   :  { %3265 = vmatpush3.bf16.msra.mxu1 %v3762_v10 }
0x17b6   :  { %2951 = vmatprep.subr.mxu1 %v3489_v12 }
0x17b9   :  { %2952 = vmatpush3.msra.mxu1 %v3770_v14 }
0x17ba   :  { %3266 = vmatprep.subr.bf16.mxu1 %v3491_v4 }
0x187f   :  { %v1844_v55 = vpop.f32.mrb[22].mxu1 }
0x1880   :  { %v1845_v56 = vadd.f32 %v1844_v55, %v3820_v46  ;;  %v2938_v57 = vpop.f32.mrb[23].mxu1 }
0x1882   :  { %v2650_v58 = vmul.f32 -1.442695, %v1845_v56 }
0x1884   :  { %3426 = vpow2.f32 %v2650_v58 }
0x188e   :  { %v3427_v59 = vpop.eup %3426 }
0x188f   :  { %v1851_v60 = vadd.f32 1.0, %v3427_v59 }
0x1891   :  { %3428 = vrcp.f32 %v1851_v60 }
0x189b   :  { %v3429_v61 = vpop.eup %3428 }
0x189c   :  { %1855 = vrot.lane.b32.xlu1 %v3429_v61, %s3494_s27 }
0x190e   :  { %v1856_v62 = vpop.permute.xlu1 %1855 }
0x190f   :  { %v1858_v63 = vsel %vm354_vm8, %v1700_v50, %v1856_v62 }
0x1910   :  { %2653 = vmatmul.mubr.msk.f32.vlgmr.msra.gmra.mrb[12].mxu0 %vm234_vm10, %v1858_v63 }
0x1911   :  { %3272 = vmatpush1.bf16.msra.mxu0 %v3598_v22  ;;  %2195 = vmatprep.mubr.f32.mxu0 %v3489_v12 }
0x1912   :  { %3274 = vmatprep.subr.bf16.mxu0 %v3601_v23 }
0x1915   :  { %3276 = vmatpush1.bf16.msra.mxu0 %v3621_v29 }
0x1916   :  { %3278 = vmatprep.subr.bf16.mxu0 %v3624_v30 }
0x1919   :  { %3280 = vmatpush1.bf16.msra.mxu0 %v3644_v36 }
0x191a   :  { %3282 = vmatprep.subr.bf16.mxu0 %v3647_v37 }
0x191d   :  { %3284 = vmatpush1.bf16.msra.mxu0 %v3667_v43 }
0x191e   :  { %3287 = vmatprep.subr.msk.bf16.mxu0 %vm3679_vm5, %v3670_v44 }
0x1921   :  { %3290 = vmatpush1.bf16.msk.msra.mxu0 %vm3679_vm5, %v3689_v49 }
0x1922   :  { %3319 = vmatprep.subr.bf16.mxu0 %v3491_v4 }
0x19e3   :  { %v1928_v22 = vpop.f32.mrb[12].mxu0 }
0x19e4   :  { %v1930_v23 = vpop.f32.mrb[13].mxu0  ;;  %v2654_v30 = vmul.f32 -1.442695, %v1928_v22  ;;  %v3462_v22 = vld [vmem:[%s4199_s4 + $0x10] sm:$0xff] }
0x19e5   :  { %v2655_v29 = vmul.f32 -1.442695, %v1930_v23 }
0x19e7   :  { %3430 = vpow2.f32 %v2655_v29 }
0x19e8   :  { %3432 = vpow2.f32 %v2654_v30 }
0x19f1   :  { %v3431_v36 = vpop.eup %3430 }
0x19f2   :  { %v1942_v37 = vadd.f32 1.0, %v3431_v36  ;;  %v3433_v43 = vpop.eup %3432 }
0x19f3   :  { %v1941_v0 = vadd.f32 1.0, %v3433_v43  ;;  %v2399_v43 = vld [vmem:[%s4200_s5 + $0x10] sm:$0xff] }
0x19f4   :  { %3434 = vrcp.f32 %v1942_v37  ;;  %v2398_v37 = vld [vmem:[%s4200_s5 + $0x8] sm:$0xff] }
0x19f5   :  { %3436 = vrcp.f32 %v1941_v0  ;;  %v2400_v0 = vld [vmem:[%s4200_s5 + $0x18] sm:$0xff] }
0x19fe   :  { %v3435_v1 = vpop.eup %3434 }
0x19ff   :  { %v1947_v44 = vmul.f32 2.0, %v3435_v1  ;;  %v3437_v49 = vpop.eup %3436 }
0x1a00   :  { %v1949_v8 = vmul.f32 %v3437_v49, %v4034_v40 }
0x1a01   :  { %v2656_v2 = vadd.f32 -1.0, %v1947_v44  ;;  %v2402_v44 = vld [vmem:[%s4200_s5 + $0x28] sm:$0xff] }
0x1a03   :  { %1951 = vrot.lane.b32.xlu0 %v2656_v2, %s3490_s0 }
0x1a07   :  { %1963 = vrot.lane.b32.xlu0 %v3437_v49, %s3490_s0 }
0x1a75   :  { %v1952_v5 = vpop.permute.xlu0 %1951 }
0x1a76   :  { %v1954_v6 = vmul.f32 %v3437_v49, %v1952_v5  ;;  %v2403_v49 = vld [vmem:[%s4200_s5 + $0x30] sm:$0xff]  ;;  %v2404_v5 = vld [vmem:[%s4200_s5 + $0x38] sm:$0xff] }
0x1a78   :  { %1956 = vrot.lane.b32.xlu1 %v1954_v6, %s3493_s21  ;;  %v3313_v6 = vpack.c.bf16 %v2404_v5, %v2403_v49 }
0x1a79   :  { %v1964_v15 = vpop.permute.xlu0 %1963 }
0x1a7c   :  { %1965 = vrot.lane.b32.xlu1 %v3435_v1, %s3490_s0  ;;  %v3307_v1 = vpack.c.bf16 %v2400_v0, %v2399_v43 }
0x1aea   :  { %v1957_v9 = vpop.permute.xlu1 %1956 }
0x1aeb   :  { %v4081_v11 = vadd.f32 %v1957_v9, %v1949_v8  ;;  %v2405_v8 = vld [vmem:[%s4200_s5 + $0x40] sm:$0xff]  ;;  %v2406_v9 = vld [vmem:[%s4200_s5 + $0x48] sm:$0xf] }
0x1aed   :  { %3438 = vtanh.f32 %v4081_v11 }
0x1aee   :  { %v1966_v13 = vpop.permute.xlu1 %1965 }
0x1aef   :  { %v1967_v19 = vsel %vm350_vm7, %v1964_v15, %v1966_v13 }
0x1af7   :  { %v3439_v17 = vpop.eup %3438 }
0x1af8   :  { %v1969_v20 = vmul.f32 %v3439_v17, %v1967_v19 }
0x1afa   :  { %2954 = vmatmul.mubr.msk.f32.vlgmr.msra.gmra.mrb[24].mxu1 %vm354_vm8, %v1969_v20 }
0x1afb   :  { %3268 = vmatpush3.bf16.msra.mxu1 %v3788_v28  ;;  %2962 = vmatprep.mubr.msk.f32.mxu1 %vm3492_vm6, %v3489_v12 }
0x1afc   :  { %2960 = vmatprep.subr.mxu1 %v3489_v12 }
0x1aff   :  { %2961 = vmatpush3.msra.mxu1 %v3795_v31 }
0x1b00   :  { %3291 = vmatprep.subr.bf16.mxu1 %v3491_v4 }
0x1bcd   :  { %v2039_v21 = vpop.f32.mrb[24].mxu1 }
0x1bce   :  { %v2040_v24 = vadd.f32 %v2039_v21, %v3805_v38  ;;  %v2955_v25 = vpop.f32.mrb[25].mxu1 }
0x1bd0   :  { %v2043_v18 = vmax.f32 %v2040_v24, 0.0 }
0x1bd2   :  { %2963 = vmatmul.mubr.msk.f32.vlgmr.msra.gmra.mrb[26].mxu1 %vm429_vm9, %v2043_v18 }
0x1bd3   :  { %3293 = vmatpush3.bf16.msra.mxu1 %v3740_v3  ;;  %2979 = vmatprep.mubr.msk.f32.mxu1 %vm3492_vm6, %v3489_v12 }
0x1bd4   :  { %3294 = vmatprep.subr.bf16.mxu1 %v3491_v4 }
0x1bd7   :  { %3296 = vmatpush3.bf16.msra.mxu1 %v3751_v7 }
0x1bd8   :  { %3297 = vmatprep.subr.bf16.mxu1 %v3491_v4 }
0x1bdb   :  { %3299 = vmatpush3.bf16.msra.mxu1 %v3762_v10 }
0x1bdc   :  { %2977 = vmatprep.subr.mxu1 %v3489_v12 }
0x1bdf   :  { %2978 = vmatpush3.msra.mxu1 %v3770_v14 }
0x1be0   :  { %3300 = vmatprep.subr.bf16.mxu1 %v3491_v4 }
0x1ca5   :  { %v2113_v31 = vpop.f32.mrb[26].mxu1 }
0x1ca6   :  { %v2114_v3 = vadd.f32 %v2113_v31, %v3820_v46  ;;  %v2964_v26 = vpop.f32.mrb[27].mxu1  ;;  %v232_v31 = vsub.s32 2, %v3799_v33 }
0x1ca8   :  { %v2659_v27 = vmul.f32 -1.442695, %v2114_v3  ;;  %v3463_v3 = vld [vmem:[%s4202_s7] sm:$0x7]  ;;  %s3495_s7 = smov [#allocation2]  }
0x1ca9   :  { %v233_v26 = vrot.slane %v3463_v3, %v232_v31  ;;  %s2580_s29 = sshll.u32 %s3495_s7, 4  ;;  %s2581_s29 = int_to_ptr.vmem [resolvable:$true] %s2580_s29 }
0x1caa   :  { %3440 = vpow2.f32 %v2659_v27  ;;  %s3464_s30 = scalar_lea.vmem %s2581_s29, 128  ;;  %p3469_p1 = scmp.lt.s32.totalorder %s2581_s29, %s2581_s29 }
0x1cab   :  { %p3465_p0 = scmp.ne.s32.totalorder %s2581_s29, %s3464_s30  ;;  %p3470_p2 = scmp.lt.s32.totalorder %s3464_s30, %s3464_s30 }
0x1cad   :  { %p3471_p3 = por %p3470_p2, %p3469_p1 }
0x1caf   :  { %p3472_p4 = pnand %p3471_p3, %p3465_p0 }
0x1cb4   :  { %v3441_v32 = vpop.eup %3440 }
0x1cb5   :  { %v2120_v16 = vadd.f32 1.0, %v3441_v32 }
0x1cb7   :  { %3442 = vrcp.f32 %v2120_v16 }
0x1cc1   :  { %v3443_v7 = vpop.eup %3442 }
0x1cc2   :  { %2124 = vrot.lane.b32.xlu0 %v3443_v7, %s3494_s27 }
0x1d34   :  { %v2125_v34 = vpop.permute.xlu0 %2124 }
0x1d35   :  { %v2127_v10 = vsel %vm354_vm8, %v1969_v20, %v2125_v34  ;;  %v2671_v34 = vld [vmem:[%s4201_s6 + $0x10] ss:$0 sm:$0xff] }
0x1d36   :  { %2662 = vmatmul.mubr.msk.f32.vlgmr.msra.gmra.mrb[14].mxu0 %vm234_vm10, %v2127_v10 }
0x1d37   :  { %3018 = vmatprep.mubr.msk.f32.mxu0 %vm3492_vm6, %v3489_v12 }
0x1e09   :  { %v2197_v14 = vpop.f32.mrb[14].mxu0 }
0x1e0a   :  { %v2199_v35 = vpop.f32.mrb[15].mxu0  ;;  %v2663_v40 = vmul.f32 -1.442695, %v2197_v14 }
0x1e0b   :  { %v2664_v39 = vmul.f32 -1.442695, %v2199_v35 }
0x1e0d   :  { %3444 = vpow2.f32 %v2664_v39 }
0x1e0e   :  { %3446 = vpow2.f32 %v2663_v40 }
0x1e17   :  { %v3445_v41 = vpop.eup %3444 }
0x1e18   :  { %v2211_v42 = vadd.f32 1.0, %v3445_v41  ;;  %v3447_v45 = vpop.eup %3446 }
0x1e19   :  { %v2210_v48 = vadd.f32 1.0, %v3447_v45 }
0x1e1a   :  { %3448 = vrcp.f32 %v2211_v42 }
0x1e1b   :  { %3450 = vrcp.f32 %v2210_v48 }
0x1e24   :  { %v3449_v50 = vpop.eup %3448 }
0x1e25   :  { %v2216_v51 = vmul.f32 2.0, %v3449_v50  ;;  %v3451_v53 = vpop.eup %3450 }
0x1e26   :  { %v2218_v56 = vmul.f32 %v3451_v53, %v4081_v11  ;;  %v3316_v11 = vpack.c.bf16 %v2406_v9, %v2405_v8 }
0x1e27   :  { %v2665_v52 = vadd.f32 -1.0, %v2216_v51 }
0x1e29   :  { %2220 = vrot.lane.b32.xlu1 %v2665_v52, %s3490_s0 }
0x1e2d   :  { %2232 = vrot.lane.b32.xlu1 %v3451_v53, %s3490_s0 }
0x1e9b   :  { %v2221_v54 = vpop.permute.xlu1 %2220 }
0x1e9c   :  { %v2223_v55 = vmul.f32 %v3451_v53, %v2221_v54 }
0x1e9e   :  { %2225 = vrot.lane.b32.xlu0 %v2223_v55, %s3493_s21 }
0x1e9f   :  { %v2233_v60 = vpop.permute.xlu1 %2232 }
0x1ea2   :  { %2234 = vrot.lane.b32.xlu0 %v3449_v50, %s3490_s0 }
0x1f10   :  { %v2226_v57 = vpop.permute.xlu0 %2225 }
0x1f11   :  { %v2228_v58 = vadd.f32 %v2226_v57, %v2218_v56 }
0x1f13   :  { %3452 = vtanh.f32 %v2228_v58 }
0x1f14   :  { %v2235_v59 = vpop.permute.xlu0 %2234 }
0x1f15   :  { %v2236_v62 = vsel %vm350_vm7, %v2233_v60, %v2235_v59 }
0x1f1d   :  { %v3453_v61 = vpop.eup %3452 }
0x1f1e   :  { %v2238_v63 = vmul.f32 %v3453_v61, %v2236_v62 }
0x1f20   :  { %2980 = vmatmul.mubr.msk.f32.vlgmr.msra.gmra.mrb[28].mxu1 %vm354_vm8, %v2238_v63 }
0x1f21   :  { %3302 = vmatpush3.bf16.msra.mxu1 %v3788_v28  ;;  %2988 = vmatprep.mubr.msk.f32.mxu1 %vm3492_vm6, %v3489_v12  ;;  %v2397_v28 = vld [vmem:[%s4200_s5] sm:$0xff] }
0x1f22   :  { %2986 = vmatprep.subr.mxu1 %v3489_v12 }
0x1f25   :  { %2987 = vmatpush3.msra.mxu1 %v3462_v22 }
0x1f26   :  { %3303 = vmatprep.subr.bf16.mxu1 %v3491_v4 }
0x1ff3   :  { %v2308_v23 = vpop.f32.mrb[28].mxu1 }
0x1ff4   :  { %v2309_v29 = vadd.f32 %v2308_v23, %v3805_v38  ;;  %v2981_v30 = vpop.f32.mrb[29].mxu1  ;;  %v3304_v38 = vpack.c.bf16 %v2398_v37, %v2397_v28 }
0x1ff6   :  { %v2312_v36 = vmax.f32 %v2309_v29, 0.0 }
0x1ff8   :  { %2989 = vmatmul.mubr.msk.f32.vlgmr.msra.gmra.mrb[30].mxu1 %vm429_vm9, %v2312_v36 }
0x1ff9   :  { %3011 = vmatprep.mubr.msk.f32.mxu1 %vm3492_vm6, %v3489_v12  ;;  %3305 = vmatpush3.bf16.msra.mxu1 %v3304_v38  ;;  %v2401_v12 = vld [vmem:[%s4200_s5 + $0x20] sm:$0xff] }
0x1ffa   :  { %3306 = vmatprep.subr.bf16.mxu1 %v3491_v4  ;;  %v3310_v2 = vpack.c.bf16 %v2402_v44, %v2401_v12 }
0x1ffd   :  { %3308 = vmatpush3.bf16.msra.mxu1 %v3307_v1 }
0x1ffe   :  { %3309 = vmatprep.subr.bf16.mxu1 %v3491_v4 }
0x2001   :  { %3311 = vmatpush3.bf16.msra.mxu1 %v3310_v2 }
0x2002   :  { %3312 = vmatprep.subr.bf16.mxu1 %v3491_v4 }
0x2005   :  { %3314 = vmatpush3.bf16.msra.mxu1 %v3313_v6 }
0x2006   :  { %3315 = vmatprep.subr.bf16.mxu1 %v3491_v4  ;;  %v2485_v4 = vld [vmem:[%s4201_s6 + $0x8] sm:$0xff] }
0x2009   :  { %3318 = vmatpush3.bf16.msk.msra.mxu1 %vm3679_vm5, %v3316_v11 }
0x20cb   :  { %v2382_v13 = vpop.f32.mrb[30].mxu1 }
0x20cc   :  { %v2383_v15 = vadd.f32 %v2382_v13, %v3820_v46  ;;  %v2990_v17 = vpop.f32.mrb[31].mxu1  ;;  %v3320_v46 = vpack.c.bf16 %v2485_v4, %v2484_v47 }
0x20ce   :  { %v2668_v19 = vmul.f32 -1.442695, %v2383_v15  ;;  %3321 = vmatpush3.bf16.msra.mxu0 %v3320_v46 }
0x20d0   :  { %3454 = vpow2.f32 %v2668_v19 }
0x20da   :  { %v3455_v20 = vpop.eup %3454 }
0x20db   :  { %v2389_v21 = vadd.f32 1.0, %v3455_v20 }
0x20dd   :  { %3456 = vrcp.f32 %v2389_v21 }
0x20e7   :  { %v3457_v24 = vpop.eup %3456 }
0x20e8   :  { %2393 = vrot.lane.b32.xlu1 %v3457_v24, %s3494_s27 }
0x215a   :  { %v2394_v25 = vpop.permute.xlu1 %2393 }
0x215b   :  { %v2396_v18 = vsel %vm354_vm8, %v2238_v63, %v2394_v25 }
0x215c   :  { %3012 = vmatmul.mubr.msk.f32.vlgmr.msra.gmra.mrb[32].mxu1 %vm234_vm10, %v2396_v18 }
0x222f   :  { %v2479_v27 = vpop.f32.mrb[32].mxu1 }
0x2230   :  { %v2480_v32 = vadd.f32 %v2479_v27, %v233_v26  ;;  %v3013_v16 = vpop.f32.mrb[33].mxu1 }
0x2232   :  { %v2483_v7 = vmax.f32 %v2480_v32, 0.0 }
0x2234   :  { %3019 = vmatmul.mubr.msk.f32.vlgmr.msra.gmra.mrb[16].mxu0 %vm350_vm7, %v2483_v7 }
0x2307   :  { %v2560_v10 = vpop.f32.mrb[16].mxu0 }
0x2308   :  { %v2561_v14 = vadd.f32 %v2671_v34, %v2560_v10  ;;  %v3020_v35 = vpop.f32.mrb[17].mxu0 }
0x230a   :  { %2564 = vmax.xlane.f32.xlu0 %v2561_v14 }
0x2397   :  { %v2565_v33 = vpop.xlane.xlu0 %2564 }
0x2398   :  { %v2566_v39 = vsub.f32 %v2561_v14, %v2565_v33 }
0x239a   :  { %v2567_v40 = vmul.f32 1.442695, %v2566_v39 }
0x239c   :  { %3458 = vpow2.f32 %v2567_v40 }
0x23a6   :  { %v3459_v41 = vpop.eup %3458 }
0x23a7   :  { %2569 = vadd.xlane.f32.xlu1 %v3459_v41 }
0x2434   :  { %v2570_v42 = vpop.xlane.xlu1 %2569 }
0x2435   :  { %3460 = vrcp.f32 %v2570_v42 }
0x243f   :  { %v3461_v45 = vpop.eup %3460 }
0x2440   :  { %v2572_v48 = vmul.f32 %v3461_v45, %v3459_v41 }
0x2442   :  { %2573 = vst [vmem:[#allocation2] sm:$0xff] %v2572_v48 }
0x2443   :  { %3475 = shalt.err (!%p3472_p4)
}
0x2444   :  { %s3476_s10 = scalar_lea.hbm %s4203_s8, 128 }
0x2445   :  { %p3477_p5 = scmp.ne.s32.totalorder %s4203_s8, %s3476_s10  ;;  %p3480_p6 = scmp.lt.u32.totalorder %s3476_s10, %s4203_s8 }
0x2447   :  { %p3482_p7 = pnand %p3480_p6, %p3477_p5 }
0x2449   :  { %3485 = shalt.err (!%p3482_p7)
}
0x244a   :  { %2583 = dma.vmem_to_hbm [thread:$0]  %s2581_s29, 128, %s4203_s8, [#allocation3]  }
0x244b   :  { %3486 = dma.done.wait [#allocation3], 128  }
0x244c   :  { %3487 = vsyncadd [#allocation3], 4294967168 }
0x244d   :  { %2587 = vsyncpa [#allocation3], 1 }

</bundles_post_ra>
